<compile_context>
chip_gen: v6e
topology: v6e:2x2x1
jax: 0.10.0
libtpu: 0.0.40
codegen_flags: <defaults>
</compile_context>

<pallas_src>
import functools
import math

import jax
import jax.numpy as jnp
from jax.experimental import pallas as pl
from jax.experimental.pallas import tpu as pltpu


_WEIGHT_KEYS = ("wq", "bq", "wk", "bk", "wv", "bv", "wo", "bo",
                "wr", "br",
                "ln1g", "ln1b", "w1", "fb1", "w2", "fb2", "ln2g", "ln2b")


def _layer_norm(v, gamma, beta, eps=1e-5):
    mu = jnp.mean(v, axis=-1, keepdims=True)
    var = jnp.mean((v - mu) ** 2, axis=-1, keepdims=True)
    return (v - mu) * jax.lax.rsqrt(var + eps) * gamma + beta


def _encoder_stack_kernel(x_ref,
                          wq_ref, bq_ref, wk_ref, bk_ref, wv_ref, bv_ref,
                          wo_ref, bo_ref, wr_ref, br_ref,
                          ln1g_ref, ln1b_ref,
                          w1_ref, fb1_ref, w2_ref, fb2_ref,
                          ln2g_ref, ln2b_ref,
                          out_ref, act_ref,
                          *, n_head, d_attn, n_active):
    l = pl.program_id(1)
    n_layers = pl.num_programs(1)
    bt, S, D = x_ref.shape
    M = bt * S
    scale = 1.0 / math.sqrt(d_attn)

    # Load the input activations once per batch tile; keep them resident in VMEM
    # across the whole layer stack.
    @pl.when(l == 0)
    def _():
        act_ref[...] = x_ref[...].reshape(M, D).astype(jnp.float32)

    x = act_ref[...]                                  # (M, D) f32
    x_bf = x.astype(jnp.bfloat16)

    # ---- router logits per token (route_type='sum' sums them over the sequence) ----
    tok_logits = jnp.dot(x, wr_ref[0],
                         preferred_element_type=jnp.float32) + br_ref[0]   # (M, H) f32

    # ---- fused (over heads) Q/K/V projections: lane-dense N = n_head*d_attn ----
    q = jnp.dot(x_bf, wq_ref[0], preferred_element_type=jnp.float32) + bq_ref[0]
    k = jnp.dot(x_bf, wk_ref[0], preferred_element_type=jnp.float32) + bk_ref[0]
    v = jnp.dot(x_bf, wv_ref[0], preferred_element_type=jnp.float32) + bv_ref[0]

    h_iota = jax.lax.broadcasted_iota(jnp.int32, (1, n_head), 1)
    ctx_rows = []
    for bi in range(bt):                              # static, small
        rs, re = bi * S, (bi + 1) * S

        # top-k hard gating (rank trick replicates lower-index tie-break of topk)
        lg = jnp.sum(tok_logits[rs:re, :], axis=0, keepdims=True)          # (1, H)
        rank = jnp.zeros((1, n_head), jnp.float32)
        for hp in range(n_head):
            lp = lg[:, hp:hp + 1]
            beats = (lp > lg) | ((lp == lg) & (hp < h_iota))
            rank = rank + beats.astype(jnp.float32)
        gates = (rank < n_active).astype(jnp.float32)                      # (1, H)

        # per-head S x S attention core (tiny), gate applied before O-projection
        head_cols = []
        for h in range(n_head):                        # static, small
            cs, ce = h * d_attn, (h + 1) * d_attn
            qh = q[rs:re, cs:ce]
            kh = k[rs:re, cs:ce]
            vh = v[rs:re, cs:ce]
            s = jnp.dot(qh, kh.T, preferred_element_type=jnp.float32) * scale
            s = s - jnp.max(s, axis=-1, keepdims=True)
            p = jnp.exp(s)
            p = p * pl.reciprocal(jnp.sum(p, axis=-1, keepdims=True), approx=True)
            head = jnp.dot(p.astype(jnp.bfloat16), vh.astype(jnp.bfloat16),
                           preferred_element_type=jnp.float32)             # (S, d_attn)
            head_cols.append(head * gates[:, h:h + 1])
        ctx_rows.append(jnp.concatenate(head_cols, axis=1))                # (S, H*da)
    ctx = jnp.concatenate(ctx_rows, axis=0) if bt > 1 else ctx_rows[0]     # (M, H*da)

    # ---- single fused O-projection ----
    attn_out = jnp.dot(ctx.astype(jnp.bfloat16), wo_ref[0],
                       preferred_element_type=jnp.float32) + bo_ref[0]     # (M, D)

    # ---- residual + LN1 ----
    y = _layer_norm(x + attn_out, ln1g_ref[0], ln1b_ref[0])

    # ---- feed-forward: Linear -> Linear -> ReLU (exactly as the nn.Sequential) ----
    h1 = jnp.dot(y.astype(jnp.bfloat16), w1_ref[0],
                 preferred_element_type=jnp.float32) + fb1_ref[0]
    h2 = jnp.dot(h1.astype(jnp.bfloat16), w2_ref[0],
                 preferred_element_type=jnp.float32) + fb2_ref[0]
    ff = jnp.maximum(h2, 0.0)

    # ---- residual + LN2 ----
    out = _layer_norm(y + ff, ln2g_ref[0], ln2b_ref[0])

    act_ref[...] = out                                 # stays resident for next layer

    @pl.when(l == n_layers - 1)
    def _():
        out_ref[...] = out.reshape(bt, S, D).astype(out_ref.dtype)


def sparse_encoder_layers(x, params, *, n_head, d_attn, n_active, batch_tile=None):
    """Full SparseEncoder stack. x: (B, S, D) f32; params: layer-stacked weights."""
    B, S, D = x.shape
    n_layers = params["wq"].shape[0]

    if batch_tile is None:
        # >=2 parallel tiles when possible (v7x megacore), otherwise one big tile.
        batch_tile = B // 2 if (B >= 2 and B % 2 == 0) else B
    assert B % batch_tile == 0
    n_bt = B // batch_tile

    weights = [params[k] for k in _WEIGHT_KEYS]

    def _wspec(w):
        # per-layer weight slice; block index follows the (last, "arbitrary") layer axis
        return pl.BlockSpec((1,) + w.shape[1:], lambda b, l: (l, 0, 0))

    kernel = functools.partial(_encoder_stack_kernel,
                               n_head=n_head, d_attn=d_attn, n_active=n_active)

    grid_spec = pltpu.PrefetchScalarGridSpec(
        num_scalar_prefetch=0,
        grid=(n_bt, n_layers),
        in_specs=[pl.BlockSpec((batch_tile, S, D), lambda b, l: (b, 0, 0))]
                 + [_wspec(w) for w in weights],
        out_specs=pl.BlockSpec((batch_tile, S, D), lambda b, l: (b, 0, 0)),
        scratch_shapes=[pltpu.VMEM((batch_tile * S, D), jnp.float32)],
    )

    return pl.pallas_call(
        kernel,
        out_shape=jax.ShapeDtypeStruct((B, S, D), x.dtype),
        grid_spec=grid_spec,
        compiler_params=pltpu.CompilerParams(
            dimension_semantics=("parallel", "arbitrary"),
            vmem_limit_bytes=32 * 1024 * 1024),
    )(x, *weights)


# ----------------------------------------------------------------------------
# Deterministic parameter init (layer-stacked, fused-head layout).
# ----------------------------------------------------------------------------
def init_stacked_params(key, n_layers, d_model, n_head, d_attn, d_ff):
    L, HDa = n_layers, n_head * d_attn
    ks = jax.random.split(key, 12)

    def w(k, shape, s=0.05, dtype=jnp.bfloat16):
        return (s * jax.random.normal(k, shape, dtype=jnp.float32)).astype(dtype)

    f32 = jnp.float32
    return dict(
        # fused per-head projections: (L, D, H*da) / (L, H*da, D), bf16 for MXU
        wq=w(ks[0], (L, d_model, HDa)), bq=w(ks[1], (L, 1, HDa), 0.01, f32),
        wk=w(ks[2], (L, d_model, HDa)), bk=w(ks[3], (L, 1, HDa), 0.01, f32),
        wv=w(ks[4], (L, d_model, HDa)), bv=w(ks[5], (L, 1, HDa), 0.01, f32),
        wo=w(ks[6], (L, HDa, d_model)), bo=w(ks[7], (L, 1, d_model), 0.01, f32),
        # router: d_model -> n_head (kept f32, tiny)
        wr=w(ks[8], (L, d_model, n_head), 0.05, f32),
        br=w(ks[9], (L, 1, n_head), 0.01, f32),
        # layernorms
        ln1g=jnp.ones((L, 1, d_model), f32), ln1b=jnp.zeros((L, 1, d_model), f32),
        ln2g=jnp.ones((L, 1, d_model), f32), ln2b=jnp.zeros((L, 1, d_model), f32),
        # feed-forward
        w1=w(ks[10], (L, d_model, d_ff)), fb1=jnp.full((L, 1, d_ff), 0.01, f32),
        w2=w(ks[11], (L, d_ff, d_model)), fb2=jnp.full((L, 1, d_model), 0.01, f32),
    )


if __name__ == "__main__":
    # Small shapes consistent with the module's forward.
    n_layers, B, S = 2, 2, 8
    d_model, n_head, n_active, d_attn, d_ff = 32, 4, 2, 8, 64

    root = jax.random.PRNGKey(0)
    x_key, w_key = jax.random.split(root)
    x = jax.random.normal(x_key, (B, S, d_model), dtype=jnp.float32)
    params = init_stacked_params(w_key, n_layers, d_model, n_head, d_attn, d_ff)

    out = sparse_encoder_layers(x, params, n_head=n_head, d_attn=d_attn,
                                n_active=n_active)
    out = jax.block_until_ready(out)
    assert out.shape == (B, S, d_model) and out.dtype == jnp.float32
    assert bool(jnp.isfinite(out).all())
    print("KERNEL_OK")
</pallas_src>

<mosaic_0001>
module attributes {stable_mosaic.version = 11 : i64} {
  func.func @_encoder_stack_kernel(%arg0: i32, %arg1: i32, %arg2: memref<1x8x32xf32, #tpu.memory_space<vmem>>, %arg3: memref<1x32x32xbf16, #tpu.memory_space<vmem>>, %arg4: memref<1x1x32xf32, #tpu.memory_space<vmem>>, %arg5: memref<1x32x32xbf16, #tpu.memory_space<vmem>>, %arg6: memref<1x1x32xf32, #tpu.memory_space<vmem>>, %arg7: memref<1x32x32xbf16, #tpu.memory_space<vmem>>, %arg8: memref<1x1x32xf32, #tpu.memory_space<vmem>>, %arg9: memref<1x32x32xbf16, #tpu.memory_space<vmem>>, %arg10: memref<1x1x32xf32, #tpu.memory_space<vmem>>, %arg11: memref<1x32x4xf32, #tpu.memory_space<vmem>>, %arg12: memref<1x1x4xf32, #tpu.memory_space<vmem>>, %arg13: memref<1x1x32xf32, #tpu.memory_space<vmem>>, %arg14: memref<1x1x32xf32, #tpu.memory_space<vmem>>, %arg15: memref<1x32x64xbf16, #tpu.memory_space<vmem>>, %arg16: memref<1x1x64xf32, #tpu.memory_space<vmem>>, %arg17: memref<1x64x32xbf16, #tpu.memory_space<vmem>>, %arg18: memref<1x1x32xf32, #tpu.memory_space<vmem>>, %arg19: memref<1x1x32xf32, #tpu.memory_space<vmem>>, %arg20: memref<1x1x32xf32, #tpu.memory_space<vmem>>, %arg21: memref<1x8x32xf32, #tpu.memory_space<vmem>>, %arg22: memref<8x32xf32, #tpu.memory_space<vmem>>) attributes {dimension_semantics = [#tpu.dimension_semantics<parallel>, #tpu.dimension_semantics<arbitrary>], iteration_bounds = array<i64: 2, 2>, scalar_prefetch = 0 : i64, scratch_operands = 1 : i64, tpu.core_type = #tpu.core_type<tc>, window_params = [{transform_indices = @transform_0, window_bounds = array<i64: 1, 8, 32>}, {transform_indices = @transform_1, window_bounds = array<i64: 1, 32, 32>}, {transform_indices = @transform_2, window_bounds = array<i64: 1, 1, 32>}, {transform_indices = @transform_3, window_bounds = array<i64: 1, 32, 32>}, {transform_indices = @transform_4, window_bounds = array<i64: 1, 1, 32>}, {transform_indices = @transform_5, window_bounds = array<i64: 1, 32, 32>}, {transform_indices = @transform_6, window_bounds = array<i64: 1, 1, 32>}, {transform_indices = @transform_7, window_bounds = array<i64: 1, 32, 32>}, {transform_indices = @transform_8, window_bounds = array<i64: 1, 1, 32>}, {transform_indices = @transform_9, window_bounds = array<i64: 1, 32, 4>}, {transform_indices = @transform_10, window_bounds = array<i64: 1, 1, 4>}, {transform_indices = @transform_11, window_bounds = array<i64: 1, 1, 32>}, {transform_indices = @transform_12, window_bounds = array<i64: 1, 1, 32>}, {transform_indices = @transform_13, window_bounds = array<i64: 1, 32, 64>}, {transform_indices = @transform_14, window_bounds = array<i64: 1, 1, 64>}, {transform_indices = @transform_15, window_bounds = array<i64: 1, 64, 32>}, {transform_indices = @transform_16, window_bounds = array<i64: 1, 1, 32>}, {transform_indices = @transform_17, window_bounds = array<i64: 1, 1, 32>}, {transform_indices = @transform_18, window_bounds = array<i64: 1, 1, 32>}, {transform_indices = @transform_19, window_bounds = array<i64: 1, 8, 32>}]} {
    %c0_i32 = arith.constant 0 : i32
    %0 = arith.cmpi eq, %arg1, %c0_i32 : i32
    %1 = arith.extui %0 : i1 to i32
    %c0_i32_0 = arith.constant 0 : i32
    %2 = arith.cmpi ne, %1, %c0_i32_0 : i32
    scf.if %2 {
      %c0_101 = arith.constant 0 : index
      %c0_102 = arith.constant 0 : index
      %c0_103 = arith.constant 0 : index
      %266 = vector.load %arg2[%c0_101, %c0_102, %c0_103] : memref<1x8x32xf32, #tpu.memory_space<vmem>>, vector<1x8x32xf32>
      %267 = vector.shape_cast %266 : vector<1x8x32xf32> to vector<8x32xf32>
      %c0_104 = arith.constant 0 : index
      %c0_105 = arith.constant 0 : index
      %268 = vector.load %arg22[%c0_104, %c0_105] : memref<8x32xf32, #tpu.memory_space<vmem>>, vector<8x32xf32>
      tpu.vector_store %arg22[%c0_104, %c0_105], %267 {strides = array<i32>} : memref<8x32xf32, #tpu.memory_space<vmem>>, vector<8x32xf32>,
    } else {
    }
    %c0 = arith.constant 0 : index
    %c0_1 = arith.constant 0 : index
    %3 = vector.load %arg22[%c0, %c0_1] : memref<8x32xf32, #tpu.memory_space<vmem>>, vector<8x32xf32>
    %4 = arith.truncf %3 : vector<8x32xf32> to vector<8x32xbf16>
    %c0_2 = arith.constant 0 : index
    %c0_3 = arith.constant 0 : index
    %c0_4 = arith.constant 0 : index
    %5 = vector.load %arg11[%c0_2, %c0_3, %c0_4] : memref<1x32x4xf32, #tpu.memory_space<vmem>>, vector<1x32x4xf32>
    %6 = vector.shape_cast %5 : vector<1x32x4xf32> to vector<32x4xf32>
    %cst = arith.constant dense<0.000000e+00> : vector<8x4xf32>
    %7 = tpu.matmul %3, %6, %cst {dimension_numbers = #tpu.dot_dimension_numbers<[1], [0], [0], [1], [0, 0, 1, 1], [], []>} : vector<8x32xf32>, vector<32x4xf32>, vector<8x4xf32> -> vector<8x4xf32>
    %c0_5 = arith.constant 0 : index
    %c0_6 = arith.constant 0 : index
    %c0_7 = arith.constant 0 : index
    %8 = vector.load %arg12[%c0_5, %c0_6, %c0_7] : memref<1x1x4xf32, #tpu.memory_space<vmem>>, vector<1x1x4xf32>
    %9 = vector.shape_cast %8 : vector<1x1x4xf32> to vector<1x4xf32>
    %10 = vector.broadcast %9 : vector<1x4xf32> to vector<8x4xf32>
    %11 = arith.addf %7, %10 : vector<8x4xf32>
    %c0_8 = arith.constant 0 : index
    %c0_9 = arith.constant 0 : index
    %c0_10 = arith.constant 0 : index
    %12 = vector.load %arg3[%c0_8, %c0_9, %c0_10] : memref<1x32x32xbf16, #tpu.memory_space<vmem>>, vector<1x32x32xbf16>
    %13 = vector.shape_cast %12 : vector<1x32x32xbf16> to vector<32x32xbf16>
    %cst_11 = arith.constant dense<0.000000e+00> : vector<8x32xf32>
    %14 = tpu.matmul %4, %13, %cst_11 {dimension_numbers = #tpu.dot_dimension_numbers<[1], [0], [0], [1], [0, 0, 1, 1], [], []>} : vector<8x32xbf16>, vector<32x32xbf16>, vector<8x32xf32> -> vector<8x32xf32>
    %c0_12 = arith.constant 0 : index
    %c0_13 = arith.constant 0 : index
    %c0_14 = arith.constant 0 : index
    %15 = vector.load %arg4[%c0_12, %c0_13, %c0_14] : memref<1x1x32xf32, #tpu.memory_space<vmem>>, vector<1x1x32xf32>
    %16 = vector.shape_cast %15 : vector<1x1x32xf32> to vector<1x32xf32>
    %17 = vector.broadcast %16 : vector<1x32xf32> to vector<8x32xf32>
    %18 = arith.addf %14, %17 : vector<8x32xf32>
    %c0_15 = arith.constant 0 : index
    %c0_16 = arith.constant 0 : index
    %c0_17 = arith.constant 0 : index
    %19 = vector.load %arg5[%c0_15, %c0_16, %c0_17] : memref<1x32x32xbf16, #tpu.memory_space<vmem>>, vector<1x32x32xbf16>
    %20 = vector.shape_cast %19 : vector<1x32x32xbf16> to vector<32x32xbf16>
    %cst_18 = arith.constant dense<0.000000e+00> : vector<8x32xf32>
    %21 = tpu.matmul %4, %20, %cst_18 {dimension_numbers = #tpu.dot_dimension_numbers<[1], [0], [0], [1], [0, 0, 1, 1], [], []>} : vector<8x32xbf16>, vector<32x32xbf16>, vector<8x32xf32> -> vector<8x32xf32>
    %c0_19 = arith.constant 0 : index
    %c0_20 = arith.constant 0 : index
    %c0_21 = arith.constant 0 : index
    %22 = vector.load %arg6[%c0_19, %c0_20, %c0_21] : memref<1x1x32xf32, #tpu.memory_space<vmem>>, vector<1x1x32xf32>
    %23 = vector.shape_cast %22 : vector<1x1x32xf32> to vector<1x32xf32>
    %24 = vector.broadcast %23 : vector<1x32xf32> to vector<8x32xf32>
    %25 = arith.addf %21, %24 : vector<8x32xf32>
    %c0_22 = arith.constant 0 : index
    %c0_23 = arith.constant 0 : index
    %c0_24 = arith.constant 0 : index
    %26 = vector.load %arg7[%c0_22, %c0_23, %c0_24] : memref<1x32x32xbf16, #tpu.memory_space<vmem>>, vector<1x32x32xbf16>
    %27 = vector.shape_cast %26 : vector<1x32x32xbf16> to vector<32x32xbf16>
    %cst_25 = arith.constant dense<0.000000e+00> : vector<8x32xf32>
    %28 = tpu.matmul %4, %27, %cst_25 {dimension_numbers = #tpu.dot_dimension_numbers<[1], [0], [0], [1], [0, 0, 1, 1], [], []>} : vector<8x32xbf16>, vector<32x32xbf16>, vector<8x32xf32> -> vector<8x32xf32>
    %c0_26 = arith.constant 0 : index
    %c0_27 = arith.constant 0 : index
    %c0_28 = arith.constant 0 : index
    %29 = vector.load %arg8[%c0_26, %c0_27, %c0_28] : memref<1x1x32xf32, #tpu.memory_space<vmem>>, vector<1x1x32xf32>
    %30 = vector.shape_cast %29 : vector<1x1x32xf32> to vector<1x32xf32>
    %31 = vector.broadcast %30 : vector<1x32xf32> to vector<8x32xf32>
    %32 = arith.addf %28, %31 : vector<8x32xf32>
    %33 = tpu.iota {dimensions = array<i32: 1>} : vector<1x4xi32>
    %cst_29 = arith.constant dense<0.000000e+00> : vector<4xf32>
    %34 = vector.multi_reduction <add>, %11, %cst_29 [0] : vector<8x4xf32> to vector<4xf32>
    %35 = vector.shape_cast %34 : vector<4xf32> to vector<1x4xf32>
    %cst_30 = arith.constant 0.000000e+00 : f32
    %36 = vector.broadcast %cst_30 : f32 to vector<1x4xf32>
    %37 = vector.extract_strided_slice %35 {offsets = [0, 0], sizes = [1, 1], strides = [1, 1]} : vector<1x4xf32> to vector<1x1xf32>
    %38 = vector.broadcast %37 : vector<1x1xf32> to vector<1x4xf32>
    %39 = arith.cmpf ogt, %38, %35 : vector<1x4xf32>
    %40 = vector.broadcast %37 : vector<1x1xf32> to vector<1x4xf32>
    %41 = arith.cmpf oeq, %40, %35 : vector<1x4xf32>
    %c0_i32_31 = arith.constant 0 : i32
    %42 = vector.broadcast %c0_i32_31 : i32 to vector<1x4xi32>
    %43 = arith.cmpi sgt, %33, %42 : vector<1x4xi32>
    %44 = arith.andi %41, %43 : vector<1x4xi1>
    %45 = arith.ori %39, %44 : vector<1x4xi1>
    %46 = arith.extui %45 : vector<1x4xi1> to vector<1x4xi32>
    %47 = arith.sitofp %46 : vector<1x4xi32> to vector<1x4xf32>
    %48 = arith.addf %36, %47 : vector<1x4xf32>
    %49 = vector.extract_strided_slice %35 {offsets = [0, 1], sizes = [1, 1], strides = [1, 1]} : vector<1x4xf32> to vector<1x1xf32>
    %50 = vector.broadcast %49 : vector<1x1xf32> to vector<1x4xf32>
    %51 = arith.cmpf ogt, %50, %35 : vector<1x4xf32>
    %52 = vector.broadcast %49 : vector<1x1xf32> to vector<1x4xf32>
    %53 = arith.cmpf oeq, %52, %35 : vector<1x4xf32>
    %c1_i32 = arith.constant 1 : i32
    %54 = vector.broadcast %c1_i32 : i32 to vector<1x4xi32>
    %55 = arith.cmpi sgt, %33, %54 : vector<1x4xi32>
    %56 = arith.andi %53, %55 : vector<1x4xi1>
    %57 = arith.ori %51, %56 : vector<1x4xi1>
    %58 = arith.extui %57 : vector<1x4xi1> to vector<1x4xi32>
    %59 = arith.sitofp %58 : vector<1x4xi32> to vector<1x4xf32>
    %60 = arith.addf %48, %59 : vector<1x4xf32>
    %61 = vector.extract_strided_slice %35 {offsets = [0, 2], sizes = [1, 1], strides = [1, 1]} : vector<1x4xf32> to vector<1x1xf32>
    %62 = vector.broadcast %61 : vector<1x1xf32> to vector<1x4xf32>
    %63 = arith.cmpf ogt, %62, %35 : vector<1x4xf32>
    %64 = vector.broadcast %61 : vector<1x1xf32> to vector<1x4xf32>
    %65 = arith.cmpf oeq, %64, %35 : vector<1x4xf32>
    %c2_i32 = arith.constant 2 : i32
    %66 = vector.broadcast %c2_i32 : i32 to vector<1x4xi32>
    %67 = arith.cmpi sgt, %33, %66 : vector<1x4xi32>
    %68 = arith.andi %65, %67 : vector<1x4xi1>
    %69 = arith.ori %63, %68 : vector<1x4xi1>
    %70 = arith.extui %69 : vector<1x4xi1> to vector<1x4xi32>
    %71 = arith.sitofp %70 : vector<1x4xi32> to vector<1x4xf32>
    %72 = arith.addf %60, %71 : vector<1x4xf32>
    %73 = vector.extract_strided_slice %35 {offsets = [0, 3], sizes = [1, 1], strides = [1, 1]} : vector<1x4xf32> to vector<1x1xf32>
    %74 = vector.broadcast %73 : vector<1x1xf32> to vector<1x4xf32>
    %75 = arith.cmpf ogt, %74, %35 : vector<1x4xf32>
    %76 = vector.broadcast %73 : vector<1x1xf32> to vector<1x4xf32>
    %77 = arith.cmpf oeq, %76, %35 : vector<1x4xf32>
    %c3_i32 = arith.constant 3 : i32
    %78 = vector.broadcast %c3_i32 : i32 to vector<1x4xi32>
    %79 = arith.cmpi sgt, %33, %78 : vector<1x4xi32>
    %80 = arith.andi %77, %79 : vector<1x4xi1>
    %81 = arith.ori %75, %80 : vector<1x4xi1>
    %82 = arith.extui %81 : vector<1x4xi1> to vector<1x4xi32>
    %83 = arith.sitofp %82 : vector<1x4xi32> to vector<1x4xf32>
    %84 = arith.addf %72, %83 : vector<1x4xf32>
    %cst_32 = arith.constant 2.000000e+00 : f32
    %85 = vector.broadcast %cst_32 : f32 to vector<1x4xf32>
    %86 = arith.cmpf olt, %84, %85 : vector<1x4xf32>
    %87 = arith.extui %86 : vector<1x4xi1> to vector<1x4xi32>
    %88 = arith.sitofp %87 : vector<1x4xi32> to vector<1x4xf32>
    %89 = vector.extract_strided_slice %18 {offsets = [0, 0], sizes = [8, 8], strides = [1, 1]} : vector<8x32xf32> to vector<8x8xf32>
    %90 = vector.extract_strided_slice %25 {offsets = [0, 0], sizes = [8, 8], strides = [1, 1]} : vector<8x32xf32> to vector<8x8xf32>
    %91 = vector.extract_strided_slice %32 {offsets = [0, 0], sizes = [8, 8], strides = [1, 1]} : vector<8x32xf32> to vector<8x8xf32>
    %92 = tpu.transpose %90, [1, 0] : vector<8x8xf32> -> vector<8x8xf32>
    %cst_33 = arith.constant dense<0.000000e+00> : vector<8x8xf32>
    %93 = tpu.matmul %89, %92, %cst_33 {dimension_numbers = #tpu.dot_dimension_numbers<[1], [0], [0], [1], [0, 0, 1, 1], [], []>} : vector<8x8xf32>, vector<8x8xf32>, vector<8x8xf32> -> vector<8x8xf32>
    %cst_34 = arith.constant 0.353553385 : f32
    %94 = vector.broadcast %cst_34 : f32 to vector<8x8xf32>
    %95 = arith.mulf %93, %94 : vector<8x8xf32>
    %cst_35 = arith.constant dense<0xFF800000> : vector<8xf32>
    %96 = vector.multi_reduction <maximumf>, %95, %cst_35 [1] : vector<8x8xf32> to vector<8xf32>
    %97 = vector.shape_cast %96 : vector<8xf32> to vector<8x1xf32>
    %98 = vector.broadcast %97 : vector<8x1xf32> to vector<8x8xf32>
    %99 = arith.subf %95, %98 : vector<8x8xf32>
    %100 = math.exp %99 : vector<8x8xf32>
    %cst_36 = arith.constant dense<0.000000e+00> : vector<8xf32>
    %101 = vector.multi_reduction <add>, %100, %cst_36 [1] : vector<8x8xf32> to vector<8xf32>
    %102 = vector.shape_cast %101 : vector<8xf32> to vector<8x1xf32>
    %103 = tpu.reciprocal %102 {approx = true} : vector<8x1xf32> -> vector<8x1xf32>
    %104 = vector.broadcast %103 : vector<8x1xf32> to vector<8x8xf32>
    %105 = arith.mulf %100, %104 : vector<8x8xf32>
    %106 = arith.truncf %105 : vector<8x8xf32> to vector<8x8xbf16>
    %107 = arith.truncf %91 : vector<8x8xf32> to vector<8x8xbf16>
    %cst_37 = arith.constant dense<0.000000e+00> : vector<8x8xf32>
    %108 = tpu.matmul %106, %107, %cst_37 {dimension_numbers = #tpu.dot_dimension_numbers<[1], [0], [0], [1], [0, 0, 1, 1], [], []>} : vector<8x8xbf16>, vector<8x8xbf16>, vector<8x8xf32> -> vector<8x8xf32>
    %109 = vector.extract_strided_slice %88 {offsets = [0, 0], sizes = [1, 1], strides = [1, 1]} : vector<1x4xf32> to vector<1x1xf32>
    %110 = vector.broadcast %109 : vector<1x1xf32> to vector<8x8xf32>
    %111 = arith.mulf %108, %110 : vector<8x8xf32>
    %112 = vector.extract_strided_slice %18 {offsets = [0, 8], sizes = [8, 8], strides = [1, 1]} : vector<8x32xf32> to vector<8x8xf32>
    %113 = vector.extract_strided_slice %25 {offsets = [0, 8], sizes = [8, 8], strides = [1, 1]} : vector<8x32xf32> to vector<8x8xf32>
    %114 = vector.extract_strided_slice %32 {offsets = [0, 8], sizes = [8, 8], strides = [1, 1]} : vector<8x32xf32> to vector<8x8xf32>
    %115 = tpu.transpose %113, [1, 0] : vector<8x8xf32> -> vector<8x8xf32>
    %cst_38 = arith.constant dense<0.000000e+00> : vector<8x8xf32>
    %116 = tpu.matmul %112, %115, %cst_38 {dimension_numbers = #tpu.dot_dimension_numbers<[1], [0], [0], [1], [0, 0, 1, 1], [], []>} : vector<8x8xf32>, vector<8x8xf32>, vector<8x8xf32> -> vector<8x8xf32>
    %cst_39 = arith.constant 0.353553385 : f32
    %117 = vector.broadcast %cst_39 : f32 to vector<8x8xf32>
    %118 = arith.mulf %116, %117 : vector<8x8xf32>
    %cst_40 = arith.constant dense<0xFF800000> : vector<8xf32>
    %119 = vector.multi_reduction <maximumf>, %118, %cst_40 [1] : vector<8x8xf32> to vector<8xf32>
    %120 = vector.shape_cast %119 : vector<8xf32> to vector<8x1xf32>
    %121 = vector.broadcast %120 : vector<8x1xf32> to vector<8x8xf32>
    %122 = arith.subf %118, %121 : vector<8x8xf32>
    %123 = math.exp %122 : vector<8x8xf32>
    %cst_41 = arith.constant dense<0.000000e+00> : vector<8xf32>
    %124 = vector.multi_reduction <add>, %123, %cst_41 [1] : vector<8x8xf32> to vector<8xf32>
    %125 = vector.shape_cast %124 : vector<8xf32> to vector<8x1xf32>
    %126 = tpu.reciprocal %125 {approx = true} : vector<8x1xf32> -> vector<8x1xf32>
    %127 = vector.broadcast %126 : vector<8x1xf32> to vector<8x8xf32>
    %128 = arith.mulf %123, %127 : vector<8x8xf32>
    %129 = arith.truncf %128 : vector<8x8xf32> to vector<8x8xbf16>
    %130 = arith.truncf %114 : vector<8x8xf32> to vector<8x8xbf16>
    %cst_42 = arith.constant dense<0.000000e+00> : vector<8x8xf32>
    %131 = tpu.matmul %129, %130, %cst_42 {dimension_numbers = #tpu.dot_dimension_numbers<[1], [0], [0], [1], [0, 0, 1, 1], [], []>} : vector<8x8xbf16>, vector<8x8xbf16>, vector<8x8xf32> -> vector<8x8xf32>
    %132 = vector.extract_strided_slice %88 {offsets = [0, 1], sizes = [1, 1], strides = [1, 1]} : vector<1x4xf32> to vector<1x1xf32>
    %133 = vector.broadcast %132 : vector<1x1xf32> to vector<8x8xf32>
    %134 = arith.mulf %131, %133 : vector<8x8xf32>
    %135 = vector.extract_strided_slice %18 {offsets = [0, 16], sizes = [8, 8], strides = [1, 1]} : vector<8x32xf32> to vector<8x8xf32>
    %136 = vector.extract_strided_slice %25 {offsets = [0, 16], sizes = [8, 8], strides = [1, 1]} : vector<8x32xf32> to vector<8x8xf32>
    %137 = vector.extract_strided_slice %32 {offsets = [0, 16], sizes = [8, 8], strides = [1, 1]} : vector<8x32xf32> to vector<8x8xf32>
    %138 = tpu.transpose %136, [1, 0] : vector<8x8xf32> -> vector<8x8xf32>
    %cst_43 = arith.constant dense<0.000000e+00> : vector<8x8xf32>
    %139 = tpu.matmul %135, %138, %cst_43 {dimension_numbers = #tpu.dot_dimension_numbers<[1], [0], [0], [1], [0, 0, 1, 1], [], []>} : vector<8x8xf32>, vector<8x8xf32>, vector<8x8xf32> -> vector<8x8xf32>
    %cst_44 = arith.constant 0.353553385 : f32
    %140 = vector.broadcast %cst_44 : f32 to vector<8x8xf32>
    %141 = arith.mulf %139, %140 : vector<8x8xf32>
    %cst_45 = arith.constant dense<0xFF800000> : vector<8xf32>
    %142 = vector.multi_reduction <maximumf>, %141, %cst_45 [1] : vector<8x8xf32> to vector<8xf32>
    %143 = vector.shape_cast %142 : vector<8xf32> to vector<8x1xf32>
    %144 = vector.broadcast %143 : vector<8x1xf32> to vector<8x8xf32>
    %145 = arith.subf %141, %144 : vector<8x8xf32>
    %146 = math.exp %145 : vector<8x8xf32>
    %cst_46 = arith.constant dense<0.000000e+00> : vector<8xf32>
    %147 = vector.multi_reduction <add>, %146, %cst_46 [1] : vector<8x8xf32> to vector<8xf32>
    %148 = vector.shape_cast %147 : vector<8xf32> to vector<8x1xf32>
    %149 = tpu.reciprocal %148 {approx = true} : vector<8x1xf32> -> vector<8x1xf32>
    %150 = vector.broadcast %149 : vector<8x1xf32> to vector<8x8xf32>
    %151 = arith.mulf %146, %150 : vector<8x8xf32>
    %152 = arith.truncf %151 : vector<8x8xf32> to vector<8x8xbf16>
    %153 = arith.truncf %137 : vector<8x8xf32> to vector<8x8xbf16>
    %cst_47 = arith.constant dense<0.000000e+00> : vector<8x8xf32>
    %154 = tpu.matmul %152, %153, %cst_47 {dimension_numbers = #tpu.dot_dimension_numbers<[1], [0], [0], [1], [0, 0, 1, 1], [], []>} : vector<8x8xbf16>, vector<8x8xbf16>, vector<8x8xf32> -> vector<8x8xf32>
    %155 = vector.extract_strided_slice %88 {offsets = [0, 2], sizes = [1, 1], strides = [1, 1]} : vector<1x4xf32> to vector<1x1xf32>
    %156 = vector.broadcast %155 : vector<1x1xf32> to vector<8x8xf32>
    %157 = arith.mulf %154, %156 : vector<8x8xf32>
    %158 = vector.extract_strided_slice %18 {offsets = [0, 24], sizes = [8, 8], strides = [1, 1]} : vector<8x32xf32> to vector<8x8xf32>
    %159 = vector.extract_strided_slice %25 {offsets = [0, 24], sizes = [8, 8], strides = [1, 1]} : vector<8x32xf32> to vector<8x8xf32>
    %160 = vector.extract_strided_slice %32 {offsets = [0, 24], sizes = [8, 8], strides = [1, 1]} : vector<8x32xf32> to vector<8x8xf32>
    %161 = tpu.transpose %159, [1, 0] : vector<8x8xf32> -> vector<8x8xf32>
    %cst_48 = arith.constant dense<0.000000e+00> : vector<8x8xf32>
    %162 = tpu.matmul %158, %161, %cst_48 {dimension_numbers = #tpu.dot_dimension_numbers<[1], [0], [0], [1], [0, 0, 1, 1], [], []>} : vector<8x8xf32>, vector<8x8xf32>, vector<8x8xf32> -> vector<8x8xf32>
    %cst_49 = arith.constant 0.353553385 : f32
    %163 = vector.broadcast %cst_49 : f32 to vector<8x8xf32>
    %164 = arith.mulf %162, %163 : vector<8x8xf32>
    %cst_50 = arith.constant dense<0xFF800000> : vector<8xf32>
    %165 = vector.multi_reduction <maximumf>, %164, %cst_50 [1] : vector<8x8xf32> to vector<8xf32>
    %166 = vector.shape_cast %165 : vector<8xf32> to vector<8x1xf32>
    %167 = vector.broadcast %166 : vector<8x1xf32> to vector<8x8xf32>
    %168 = arith.subf %164, %167 : vector<8x8xf32>
    %169 = math.exp %168 : vector<8x8xf32>
    %cst_51 = arith.constant dense<0.000000e+00> : vector<8xf32>
    %170 = vector.multi_reduction <add>, %169, %cst_51 [1] : vector<8x8xf32> to vector<8xf32>
    %171 = vector.shape_cast %170 : vector<8xf32> to vector<8x1xf32>
    %172 = tpu.reciprocal %171 {approx = true} : vector<8x1xf32> -> vector<8x1xf32>
    %173 = vector.broadcast %172 : vector<8x1xf32> to vector<8x8xf32>
    %174 = arith.mulf %169, %173 : vector<8x8xf32>
    %175 = arith.truncf %174 : vector<8x8xf32> to vector<8x8xbf16>
    %176 = arith.truncf %160 : vector<8x8xf32> to vector<8x8xbf16>
    %cst_52 = arith.constant dense<0.000000e+00> : vector<8x8xf32>
    %177 = tpu.matmul %175, %176, %cst_52 {dimension_numbers = #tpu.dot_dimension_numbers<[1], [0], [0], [1], [0, 0, 1, 1], [], []>} : vector<8x8xbf16>, vector<8x8xbf16>, vector<8x8xf32> -> vector<8x8xf32>
    %178 = vector.extract_strided_slice %88 {offsets = [0, 3], sizes = [1, 1], strides = [1, 1]} : vector<1x4xf32> to vector<1x1xf32>
    %179 = vector.broadcast %178 : vector<1x1xf32> to vector<8x8xf32>
    %180 = arith.mulf %177, %179 : vector<8x8xf32>
    %181 = tpu.concatenate %111, %134, %157, %180 in 1 : vector<8x8xf32>, vector<8x8xf32>, vector<8x8xf32>, vector<8x8xf32> -> vector<8x32xf32>
    %182 = arith.truncf %181 : vector<8x32xf32> to vector<8x32xbf16>
    %c0_53 = arith.constant 0 : index
    %c0_54 = arith.constant 0 : index
    %c0_55 = arith.constant 0 : index
    %183 = vector.load %arg9[%c0_53, %c0_54, %c0_55] : memref<1x32x32xbf16, #tpu.memory_space<vmem>>, vector<1x32x32xbf16>
    %184 = vector.shape_cast %183 : vector<1x32x32xbf16> to vector<32x32xbf16>
    %cst_56 = arith.constant dense<0.000000e+00> : vector<8x32xf32>
    %185 = tpu.matmul %182, %184, %cst_56 {dimension_numbers = #tpu.dot_dimension_numbers<[1], [0], [0], [1], [0, 0, 1, 1], [], []>} : vector<8x32xbf16>, vector<32x32xbf16>, vector<8x32xf32> -> vector<8x32xf32>
    %c0_57 = arith.constant 0 : index
    %c0_58 = arith.constant 0 : index
    %c0_59 = arith.constant 0 : index
    %186 = vector.load %arg10[%c0_57, %c0_58, %c0_59] : memref<1x1x32xf32, #tpu.memory_space<vmem>>, vector<1x1x32xf32>
    %187 = vector.shape_cast %186 : vector<1x1x32xf32> to vector<1x32xf32>
    %188 = vector.broadcast %187 : vector<1x32xf32> to vector<8x32xf32>
    %189 = arith.addf %185, %188 : vector<8x32xf32>
    %190 = arith.addf %3, %189 : vector<8x32xf32>
    %c0_60 = arith.constant 0 : index
    %c0_61 = arith.constant 0 : index
    %c0_62 = arith.constant 0 : index
    %191 = vector.load %arg13[%c0_60, %c0_61, %c0_62] : memref<1x1x32xf32, #tpu.memory_space<vmem>>, vector<1x1x32xf32>
    %192 = vector.shape_cast %191 : vector<1x1x32xf32> to vector<1x32xf32>
    %c0_63 = arith.constant 0 : index
    %c0_64 = arith.constant 0 : index
    %c0_65 = arith.constant 0 : index
    %193 = vector.load %arg14[%c0_63, %c0_64, %c0_65] : memref<1x1x32xf32, #tpu.memory_space<vmem>>, vector<1x1x32xf32>
    %194 = vector.shape_cast %193 : vector<1x1x32xf32> to vector<1x32xf32>
    %cst_66 = arith.constant dense<0.000000e+00> : vector<8xf32>
    %195 = vector.multi_reduction <add>, %190, %cst_66 [1] : vector<8x32xf32> to vector<8xf32>
    %196 = vector.shape_cast %195 : vector<8xf32> to vector<8x1xf32>
    %cst_67 = arith.constant 3.200000e+01 : f32
    %197 = vector.broadcast %cst_67 : f32 to vector<8x1xf32>
    %198 = arith.divf %196, %197 : vector<8x1xf32>
    %199 = vector.broadcast %198 : vector<8x1xf32> to vector<8x32xf32>
    %200 = arith.subf %190, %199 : vector<8x32xf32>
    %201 = arith.mulf %200, %200 : vector<8x32xf32>
    %cst_68 = arith.constant dense<0.000000e+00> : vector<8xf32>
    %202 = vector.multi_reduction <add>, %201, %cst_68 [1] : vector<8x32xf32> to vector<8xf32>
    %203 = vector.shape_cast %202 : vector<8xf32> to vector<8x1xf32>
    %cst_69 = arith.constant 3.200000e+01 : f32
    %204 = vector.broadcast %cst_69 : f32 to vector<8x1xf32>
    %205 = arith.divf %203, %204 : vector<8x1xf32>
    %206 = vector.broadcast %198 : vector<8x1xf32> to vector<8x32xf32>
    %207 = arith.subf %190, %206 : vector<8x32xf32>
    %cst_70 = arith.constant 9.99999974E-6 : f32
    %208 = vector.broadcast %cst_70 : f32 to vector<8x1xf32>
    %209 = arith.addf %205, %208 : vector<8x1xf32>
    %210 = math.rsqrt %209 : vector<8x1xf32>
    %211 = vector.broadcast %210 : vector<8x1xf32> to vector<8x32xf32>
    %212 = arith.mulf %207, %211 : vector<8x32xf32>
    %213 = vector.broadcast %192 : vector<1x32xf32> to vector<8x32xf32>
    %214 = arith.mulf %212, %213 : vector<8x32xf32>
    %215 = vector.broadcast %194 : vector<1x32xf32> to vector<8x32xf32>
    %216 = arith.addf %214, %215 : vector<8x32xf32>
    %217 = arith.truncf %216 : vector<8x32xf32> to vector<8x32xbf16>
    %c0_71 = arith.constant 0 : index
    %c0_72 = arith.constant 0 : index
    %c0_73 = arith.constant 0 : index
    %218 = vector.load %arg15[%c0_71, %c0_72, %c0_73] : memref<1x32x64xbf16, #tpu.memory_space<vmem>>, vector<1x32x64xbf16>
    %219 = vector.shape_cast %218 : vector<1x32x64xbf16> to vector<32x64xbf16>
    %cst_74 = arith.constant dense<0.000000e+00> : vector<8x64xf32>
    %220 = tpu.matmul %217, %219, %cst_74 {dimension_numbers = #tpu.dot_dimension_numbers<[1], [0], [0], [1], [0, 0, 1, 1], [], []>} : vector<8x32xbf16>, vector<32x64xbf16>, vector<8x64xf32> -> vector<8x64xf32>
    %c0_75 = arith.constant 0 : index
    %c0_76 = arith.constant 0 : index
    %c0_77 = arith.constant 0 : index
    %221 = vector.load %arg16[%c0_75, %c0_76, %c0_77] : memref<1x1x64xf32, #tpu.memory_space<vmem>>, vector<1x1x64xf32>
    %222 = vector.shape_cast %221 : vector<1x1x64xf32> to vector<1x64xf32>
    %223 = vector.broadcast %222 : vector<1x64xf32> to vector<8x64xf32>
    %224 = arith.addf %220, %223 : vector<8x64xf32>
    %225 = arith.truncf %224 : vector<8x64xf32> to vector<8x64xbf16>
    %c0_78 = arith.constant 0 : index
    %c0_79 = arith.constant 0 : index
    %c0_80 = arith.constant 0 : index
    %226 = vector.load %arg17[%c0_78, %c0_79, %c0_80] : memref<1x64x32xbf16, #tpu.memory_space<vmem>>, vector<1x64x32xbf16>
    %227 = vector.shape_cast %226 : vector<1x64x32xbf16> to vector<64x32xbf16>
    %cst_81 = arith.constant dense<0.000000e+00> : vector<8x32xf32>
    %228 = tpu.matmul %225, %227, %cst_81 {dimension_numbers = #tpu.dot_dimension_numbers<[1], [0], [0], [1], [0, 0, 1, 1], [], []>} : vector<8x64xbf16>, vector<64x32xbf16>, vector<8x32xf32> -> vector<8x32xf32>
    %c0_82 = arith.constant 0 : index
    %c0_83 = arith.constant 0 : index
    %c0_84 = arith.constant 0 : index
    %229 = vector.load %arg18[%c0_82, %c0_83, %c0_84] : memref<1x1x32xf32, #tpu.memory_space<vmem>>, vector<1x1x32xf32>
    %230 = vector.shape_cast %229 : vector<1x1x32xf32> to vector<1x32xf32>
    %231 = vector.broadcast %230 : vector<1x32xf32> to vector<8x32xf32>
    %232 = arith.addf %228, %231 : vector<8x32xf32>
    %cst_85 = arith.constant 0.000000e+00 : f32
    %233 = vector.broadcast %cst_85 : f32 to vector<8x32xf32>
    %234 = arith.maximumf %232, %233 : vector<8x32xf32>
    %235 = arith.addf %216, %234 : vector<8x32xf32>
    %c0_86 = arith.constant 0 : index
    %c0_87 = arith.constant 0 : index
    %c0_88 = arith.constant 0 : index
    %236 = vector.load %arg19[%c0_86, %c0_87, %c0_88] : memref<1x1x32xf32, #tpu.memory_space<vmem>>, vector<1x1x32xf32>
    %237 = vector.shape_cast %236 : vector<1x1x32xf32> to vector<1x32xf32>
    %c0_89 = arith.constant 0 : index
    %c0_90 = arith.constant 0 : index
    %c0_91 = arith.constant 0 : index
    %238 = vector.load %arg20[%c0_89, %c0_90, %c0_91] : memref<1x1x32xf32, #tpu.memory_space<vmem>>, vector<1x1x32xf32>
    %239 = vector.shape_cast %238 : vector<1x1x32xf32> to vector<1x32xf32>
    %cst_92 = arith.constant dense<0.000000e+00> : vector<8xf32>
    %240 = vector.multi_reduction <add>, %235, %cst_92 [1] : vector<8x32xf32> to vector<8xf32>
    %241 = vector.shape_cast %240 : vector<8xf32> to vector<8x1xf32>
    %cst_93 = arith.constant 3.200000e+01 : f32
    %242 = vector.broadcast %cst_93 : f32 to vector<8x1xf32>
    %243 = arith.divf %241, %242 : vector<8x1xf32>
    %244 = vector.broadcast %243 : vector<8x1xf32> to vector<8x32xf32>
    %245 = arith.subf %235, %244 : vector<8x32xf32>
    %246 = arith.mulf %245, %245 : vector<8x32xf32>
    %cst_94 = arith.constant dense<0.000000e+00> : vector<8xf32>
    %247 = vector.multi_reduction <add>, %246, %cst_94 [1] : vector<8x32xf32> to vector<8xf32>
    %248 = vector.shape_cast %247 : vector<8xf32> to vector<8x1xf32>
    %cst_95 = arith.constant 3.200000e+01 : f32
    %249 = vector.broadcast %cst_95 : f32 to vector<8x1xf32>
    %250 = arith.divf %248, %249 : vector<8x1xf32>
    %251 = vector.broadcast %243 : vector<8x1xf32> to vector<8x32xf32>
    %252 = arith.subf %235, %251 : vector<8x32xf32>
    %cst_96 = arith.constant 9.99999974E-6 : f32
    %253 = vector.broadcast %cst_96 : f32 to vector<8x1xf32>
    %254 = arith.addf %250, %253 : vector<8x1xf32>
    %255 = math.rsqrt %254 : vector<8x1xf32>
    %256 = vector.broadcast %255 : vector<8x1xf32> to vector<8x32xf32>
    %257 = arith.mulf %252, %256 : vector<8x32xf32>
    %258 = vector.broadcast %237 : vector<1x32xf32> to vector<8x32xf32>
    %259 = arith.mulf %257, %258 : vector<8x32xf32>
    %260 = vector.broadcast %239 : vector<1x32xf32> to vector<8x32xf32>
    %261 = arith.addf %259, %260 : vector<8x32xf32>
    %c0_97 = arith.constant 0 : index
    %c0_98 = arith.constant 0 : index
    %262 = vector.load %arg22[%c0_97, %c0_98] : memref<8x32xf32, #tpu.memory_space<vmem>>, vector<8x32xf32>
    tpu.vector_store %arg22[%c0_97, %c0_98], %261 {strides = array<i32>} : memref<8x32xf32, #tpu.memory_space<vmem>>, vector<8x32xf32>,
    %c1_i32_99 = arith.constant 1 : i32
    %263 = arith.cmpi eq, %arg1, %c1_i32_99 : i32
    %264 = arith.extui %263 : i1 to i32
    %c0_i32_100 = arith.constant 0 : i32
    %265 = arith.cmpi ne, %264, %c0_i32_100 : i32
    scf.if %265 {
      %266 = vector.shape_cast %261 : vector<8x32xf32> to vector<1x8x32xf32>
      %c0_101 = arith.constant 0 : index
      %c0_102 = arith.constant 0 : index
      %c0_103 = arith.constant 0 : index
      %267 = vector.load %arg21[%c0_101, %c0_102, %c0_103] : memref<1x8x32xf32, #tpu.memory_space<vmem>>, vector<1x8x32xf32>
      tpu.vector_store %arg21[%c0_101, %c0_102, %c0_103], %266 {strides = array<i32>} : memref<1x8x32xf32, #tpu.memory_space<vmem>>, vector<1x8x32xf32>,
    } else {
    }
    return
  }
  func.func @transform_0(%arg0: i32, %arg1: i32) -> (i32, i32, i32) {
    %c0_i32 = arith.constant 0 : i32
    %c0_i32_0 = arith.constant 0 : i32
    %c0_i32_1 = arith.constant 0 : i32
    return %arg0, %c0_i32, %c0_i32_0 : i32, i32, i32
  }
  func.func @transform_1(%arg0: i32, %arg1: i32) -> (i32, i32, i32) {
    %c0_i32 = arith.constant 0 : i32
    %c0_i32_0 = arith.constant 0 : i32
    %c0_i32_1 = arith.constant 0 : i32
    return %arg1, %c0_i32, %c0_i32_0 : i32, i32, i32
  }
  func.func @transform_2(%arg0: i32, %arg1: i32) -> (i32, i32, i32) {
    %c0_i32 = arith.constant 0 : i32
    %c0_i32_0 = arith.constant 0 : i32
    %c0_i32_1 = arith.constant 0 : i32
    return %arg1, %c0_i32, %c0_i32_0 : i32, i32, i32
  }
  func.func @transform_3(%arg0: i32, %arg1: i32) -> (i32, i32, i32) {
    %c0_i32 = arith.constant 0 : i32
    %c0_i32_0 = arith.constant 0 : i32
    %c0_i32_1 = arith.constant 0 : i32
    return %arg1, %c0_i32, %c0_i32_0 : i32, i32, i32
  }
  func.func @transform_4(%arg0: i32, %arg1: i32) -> (i32, i32, i32) {
    %c0_i32 = arith.constant 0 : i32
    %c0_i32_0 = arith.constant 0 : i32
    %c0_i32_1 = arith.constant 0 : i32
    return %arg1, %c0_i32, %c0_i32_0 : i32, i32, i32
  }
  func.func @transform_5(%arg0: i32, %arg1: i32) -> (i32, i32, i32) {
    %c0_i32 = arith.constant 0 : i32
    %c0_i32_0 = arith.constant 0 : i32
    %c0_i32_1 = arith.constant 0 : i32
    return %arg1, %c0_i32, %c0_i32_0 : i32, i32, i32
  }
  func.func @transform_6(%arg0: i32, %arg1: i32) -> (i32, i32, i32) {
    %c0_i32 = arith.constant 0 : i32
    %c0_i32_0 = arith.constant 0 : i32
    %c0_i32_1 = arith.constant 0 : i32
    return %arg1, %c0_i32, %c0_i32_0 : i32, i32, i32
  }
  func.func @transform_7(%arg0: i32, %arg1: i32) -> (i32, i32, i32) {
    %c0_i32 = arith.constant 0 : i32
    %c0_i32_0 = arith.constant 0 : i32
    %c0_i32_1 = arith.constant 0 : i32
    return %arg1, %c0_i32, %c0_i32_0 : i32, i32, i32
  }
  func.func @transform_8(%arg0: i32, %arg1: i32) -> (i32, i32, i32) {
    %c0_i32 = arith.constant 0 : i32
    %c0_i32_0 = arith.constant 0 : i32
    %c0_i32_1 = arith.constant 0 : i32
    return %arg1, %c0_i32, %c0_i32_0 : i32, i32, i32
  }
  func.func @transform_9(%arg0: i32, %arg1: i32) -> (i32, i32, i32) {
    %c0_i32 = arith.constant 0 : i32
    %c0_i32_0 = arith.constant 0 : i32
    %c0_i32_1 = arith.constant 0 : i32
    return %arg1, %c0_i32, %c0_i32_0 : i32, i32, i32
  }
  func.func @transform_10(%arg0: i32, %arg1: i32) -> (i32, i32, i32) {
    %c0_i32 = arith.constant 0 : i32
    %c0_i32_0 = arith.constant 0 : i32
    %c0_i32_1 = arith.constant 0 : i32
    return %arg1, %c0_i32, %c0_i32_0 : i32, i32, i32
  }
  func.func @transform_11(%arg0: i32, %arg1: i32) -> (i32, i32, i32) {
    %c0_i32 = arith.constant 0 : i32
    %c0_i32_0 = arith.constant 0 : i32
    %c0_i32_1 = arith.constant 0 : i32
    return %arg1, %c0_i32, %c0_i32_0 : i32, i32, i32
  }
  func.func @transform_12(%arg0: i32, %arg1: i32) -> (i32, i32, i32) {
    %c0_i32 = arith.constant 0 : i32
    %c0_i32_0 = arith.constant 0 : i32
    %c0_i32_1 = arith.constant 0 : i32
    return %arg1, %c0_i32, %c0_i32_0 : i32, i32, i32
  }
  func.func @transform_13(%arg0: i32, %arg1: i32) -> (i32, i32, i32) {
    %c0_i32 = arith.constant 0 : i32
    %c0_i32_0 = arith.constant 0 : i32
    %c0_i32_1 = arith.constant 0 : i32
    return %arg1, %c0_i32, %c0_i32_0 : i32, i32, i32
  }
  func.func @transform_14(%arg0: i32, %arg1: i32) -> (i32, i32, i32) {
    %c0_i32 = arith.constant 0 : i32
    %c0_i32_0 = arith.constant 0 : i32
    %c0_i32_1 = arith.constant 0 : i32
    return %arg1, %c0_i32, %c0_i32_0 : i32, i32, i32
  }
  func.func @transform_15(%arg0: i32, %arg1: i32) -> (i32, i32, i32) {
    %c0_i32 = arith.constant 0 : i32
    %c0_i32_0 = arith.constant 0 : i32
    %c0_i32_1 = arith.constant 0 : i32
    return %arg1, %c0_i32, %c0_i32_0 : i32, i32, i32
  }
  func.func @transform_16(%arg0: i32, %arg1: i32) -> (i32, i32, i32) {
    %c0_i32 = arith.constant 0 : i32
    %c0_i32_0 = arith.constant 0 : i32
    %c0_i32_1 = arith.constant 0 : i32
    return %arg1, %c0_i32, %c0_i32_0 : i32, i32, i32
  }
  func.func @transform_17(%arg0: i32, %arg1: i32) -> (i32, i32, i32) {
    %c0_i32 = arith.constant 0 : i32
    %c0_i32_0 = arith.constant 0 : i32
    %c0_i32_1 = arith.constant 0 : i32
    return %arg1, %c0_i32, %c0_i32_0 : i32, i32, i32
  }
  func.func @transform_18(%arg0: i32, %arg1: i32) -> (i32, i32, i32) {
    %c0_i32 = arith.constant 0 : i32
    %c0_i32_0 = arith.constant 0 : i32
    %c0_i32_1 = arith.constant 0 : i32
    return %arg1, %c0_i32, %c0_i32_0 : i32, i32, i32
  }
  func.func @transform_19(%arg0: i32, %arg1: i32) -> (i32, i32, i32) {
    %c0_i32 = arith.constant 0 : i32
    %c0_i32_0 = arith.constant 0 : i32
    %c0_i32_1 = arith.constant 0 : i32
    return %arg0, %c0_i32, %c0_i32_0 : i32, i32, i32
  }
}

</mosaic_0001>

<bundles_post_ra>
// kernel: tpu_custom_call.1
= control target key start
LH: loop header
LB: loop body
LE: loop exit
PB: predicated region body
PF: predicated region fallthrough
CT: control target
= control target key end

     0   :  { %s3683_s0 = inlined_call_operand.hbm [shape: f32[2,8,32], index: 0, kind: input, shape index: {}]   ;;  %s3684_s1 = inlined_call_operand.vmem [shape: bf16[2,32,32], index: 1, kind: input, shape index: {}]   ;;  %s3685_s2 = inlined_call_operand.vmem [shape: f32[2,1,32], index: 2, kind: input, shape index: {}]   ;;  %s3686_s3 = inlined_call_operand.vmem [shape: bf16[2,32,32], index: 3, kind: input, shape index: {}]   ;;  %s3687_s4 = inlined_call_operand.vmem [shape: f32[2,1,32], index: 4, kind: input, shape index: {}]   ;;  %s3688_s5 = inlined_call_operand.vmem [shape: bf16[2,32,32], index: 5, kind: input, shape index: {}]   ;;  %s3689_s6 = inlined_call_operand.vmem [shape: f32[2,1,32], index: 6, kind: input, shape index: {}]   ;;  %s3690_s7 = inlined_call_operand.vmem [shape: bf16[2,32,32], index: 7, kind: input, shape index: {}]   ;;  %s3691_s8 = inlined_call_operand.vmem [shape: f32[2,1,32], index: 8, kind: input, shape index: {}]   ;;  %s3692_s9 = inlined_call_operand.vmem [shape: f32[2,32,4], index: 9, kind: input, shape index: {}]   ;;  %s3693_s10 = inlined_call_operand.vmem [shape: f32[2,1,4], index: 10, kind: input, shape index: {}]   ;;  %s3694_s11 = inlined_call_operand.vmem [shape: f32[2,1,32], index: 11, kind: input, shape index: {}]   ;;  %s3695_s12 = inlined_call_operand.vmem [shape: f32[2,1,32], index: 12, kind: input, shape index: {}]   ;;  %s3696_s13 = inlined_call_operand.hbm [shape: bf16[2,32,64], index: 13, kind: input, shape index: {}]   ;;  %s3697_s14 = inlined_call_operand.vmem [shape: f32[2,1,64], index: 14, kind: input, shape index: {}]   ;;  %s3698_s15 = inlined_call_operand.vmem [shape: bf16[2,64,32], index: 15, kind: input, shape index: {}]   ;;  %s3699_s16 = inlined_call_operand.vmem [shape: f32[2,1,32], index: 16, kind: input, shape index: {}]   ;;  %s3700_s17 = inlined_call_operand.vmem [shape: f32[2,1,32], index: 17, kind: input, shape index: {}]   ;;  %s3701_s18 = inlined_call_operand.vmem [shape: f32[2,1,32], index: 18, kind: input, shape index: {}]   ;;  %s3702_s19 = inlined_call_operand.hbm [shape: f32[2,8,32], index: 19, kind: output, shape index: {}]  }
   0x1   :  { %3724 = sst [smem:[#allocation29_spill]] %s3683_s0 }
   0x2   :  { %3725 = sst [smem:[#allocation30_spill]] %s3684_s1 }
   0x3   :  { %3726 = sst [smem:[#allocation31_spill]] %s3685_s2 }
   0x4   :  { %3727 = sst [smem:[#allocation32_spill]] %s3686_s3 }
   0x5   :  { %3728 = sst [smem:[#allocation33_spill]] %s3688_s5 }
   0x6   :  { %3729 = sst [smem:[#allocation34_spill]] %s3689_s6 }
   0x7   :  { %3730 = sst [smem:[#allocation35_spill]] %s3690_s7 }
   0x8   :  { %3731 = sst [smem:[#allocation36_spill]] %s3691_s8 }
   0x9   :  { %3732 = sst [smem:[#allocation37_spill]] %s3692_s9 }
   0xa   :  { %3733 = sst [smem:[#allocation38_spill]] %s3693_s10 }
   0xb   :  { %3734 = sst [smem:[#allocation39_spill]] %s3694_s11 }
   0xc   :  { %3735 = sst [smem:[#allocation40_spill]] %s3695_s12 }
   0xd   :  { %3736 = sst [smem:[#allocation41_spill]] %s3696_s13 }
   0xe   :  { %3737 = sst [smem:[#allocation42_spill]] %s3697_s14 }
   0xf   :  { %3738 = sst [smem:[#allocation43_spill]] %s3698_s15 }
  0x10   :  { %3739 = sst [smem:[#allocation44_spill]] %s3699_s16 }
  0x11   :  { %3740 = sst [smem:[#allocation45_spill]] %s3700_s17 }
  0x12   :  { %3741 = sst [smem:[#allocation46_spill]] %s3701_s18 }
  0x13   :  { %3742 = sst [smem:[#allocation47_spill]] %s3702_s19 }
  0x14   :  { %24 = vsyncpa [#allocation4], 0 }
  0x15   :  { %26 = vsyncpa [#allocation4 + $0x1], 0 }
  0x16   :  { %27 = vsyncpa [#allocation7], 0 }
  0x17   :  { %29 = vsyncpa [#allocation7 + $0x1], 0 }
  0x18   :  { %30 = vsyncpa [#allocation5], 0 }
  0x19   :  { %32 = vsyncpa [#allocation5 + $0x1], 0  ;;  %s3159_s0 = smov 0   ;;  %s3161_s30 = smov 0  }
  0x1a   :  { %s3163_s20 = smov 0   ;;  %s3165_s21 = smov 0  }
  0x1b   :  { %s3167_s1 = smov 0   ;;  %s3169_s22 = smov 0  }
  0x1c   :  { %s3171_s2 = smov 0   ;;  %s3173_s23 = smov 0  }
  0x1d   :  { %s3175_s24 = smov 0   ;;  %s3177_s25 = smov 0  }
  0x1e   :  { %s3179_s3 = smov 0  }
  0x1f LB: > { %3743 = sst [smem:[#allocation12_spill]] %s3004_s30  ;;  %s2462_s26 = sadd.s32 4294967295, %s3040_s3   ;;  %s3040_s3 = sphi %s3179_s3, %s38_s3   ;;  %s3036_s25 = sphi %s3177_s25, %s3831_s25   ;;  %s3032_s24 = sphi %s3175_s24, %s3830_s24   ;;  %s3028_s23 = sphi %s3173_s23, %s3829_s23   ;;  %s3024_s2 = sphi %s3171_s2, %s3828_s2   ;;  %s3020_s22 = sphi %s3169_s22, %s3827_s22   ;;  %s3016_s1 = sphi %s3167_s1, %s3826_s1   ;;  %s3012_s21 = sphi %s3165_s21, %s3825_s21   ;;  %s3008_s20 = sphi %s3163_s20, %s3824_s20   ;;  %s3004_s30 = sphi %s3161_s30, %s3823_s30   ;;  %s3000_s0 = sphi %s3159_s0, %s3822_s0  }
  0x20   : > { %3744 = sst [smem:[#allocation13_spill]] %s3008_s20  ;;  %s2463_s27 = sadd.s32 4294967294, %s3040_s3  }
  0x21   : > { %3745 = sst [smem:[#allocation14_spill]] %s3012_s21  ;;  %p64_p0 = scmp.ne.s32.totalorder %s3020_s22, %s3016_s1 }
  0x22   : > { %3746 = sst [smem:[#allocation15_spill]] %s3016_s1  ;;  %p65_p1 = scmp.eq.s32.totalorder %s3040_s3, 0 }
  0x23   : > { %3747 = sst [smem:[#allocation16_spill]] %s3020_s22  ;;  %p70_p2 = scmp.ne.s32.totalorder %s3016_s1, %s3012_s21 }
  0x24   : > { %3748 = sst [smem:[#allocation17_spill]] %s3028_s23  ;;  %p71_p3 = scmp.eq.s32.totalorder %s2462_s26, 0 }
  0x25   : > { %3749 = sst [smem:[#allocation18_spill]] %s3032_s24  ;;  %p3221_p4 = por %p65_p1, %p64_p0 }
  0x26   : > { %3750 = sst [smem:[#allocation19_spill]] %s3036_s25  ;;  %p402_p5 = scmp.ne.s32.totalorder %s3008_s20, %s3004_s30 }
  0x27   : > { %3751 = sst [smem:[#allocation20_spill]] %s3040_s3  ;;  %p3227_p6 = por %p71_p3, %p70_p2 }
  0x28   : > { %p408_p7 = scmp.ne.s32.totalorder %s3004_s30, %s3000_s0  ;;  %p3232_p8 = por %p402_p5, %p65_p1 }
  0x29   : > { %p562_p9 = scmp.eq.s32.totalorder %s2462_s26, 3  ;;  %p568_p11 = scmp.eq.s32.totalorder %s2463_s27, 3 }
  0x2a   : > { %p3236_p10 = por %p408_p7, %p71_p3  ;;  %p2714_p1 = scmp.lt.s32.totalorder %s3040_s3, 4 }
  0x2b   : > { %p3240_p12 = por %p562_p9, %p64_p0  ;;  %p3244_p13 = por %p568_p11, %p70_p2 }
  0x2c   : > { %s3755_s29 = scalar_select %p3236_p10, 1, 0 }
  0x2d   : > { %s3756_s21 = scalar_select %p3240_p12, 1, 0 }
  0x2e   : > { %s3758_s18 = scalar_select %p3244_p13, 1, 0 }
  0x2f   : > { %3757 = sst [smem:[#allocation21_spill]] %s3756_s21  ;;  %s588_s0 = sand.u32 1, %s3020_s22  }
  0x30   : > { %3759 = sst [smem:[#allocation22_spill]] %s3758_s18  ;;  %s2467_s17 = sshll.u32 %s3036_s25, 7 }
  0x31   : > { %s2466_s16 = sshll.u32 %s588_s0, 3  ;;  %s3760_s26 = sld [smem:[#allocation29_spill]] }
  0x32   : > { %s592_s11 = scalar_lea.vmem [#allocation3], %s2466_s16  ;;  %p3256_p3 = pnand %p2714_p1, %p3221_p4 }
  0x33   : > { %s599_s10 = sshll.u32 %s592_s11, 4  ;;  %p3262_p0 = pnand %p2714_p1, %p3232_p8  ;;  %s600_s10 = int_to_ptr.vmem [resolvable:$true] %s599_s10 }
  0x34   : > { %p2471_p2 = scmp.ge.s32.totalorder %s3040_s3, 1  ;;  %s589_s21 = scalar_lea.sflag [#allocation4], %s588_s0 }
  0x35   : > { %p2862_p5 = pneg %p3256_p3  ;;  %s2873_s14 = scalar_lea.vmem %s600_s10, 128 }
  0x36   : > { %p2874_p7 = scmp.ne.s32.totalorder %s600_s10, %s2873_s14  ;;  %s3042_s11 = smov [#allocation3]  }
  0x37   : > { %s597_s12 = scalar_lea.hbm %s3760_s26, %s2467_s17  ;;  %s2878_s15 = sshll.u32 %s3042_s11, 4  ;;  %s2879_s15 = int_to_ptr.vmem [resolvable:$false] %s2878_s15 }
  0x38   : > { %p2876_p9 = pnand %p2874_p7, %p2862_p5  ;;  %s2880_s16 = scalar_lea.vmem %s2879_s15, 256 }
  0x39   : > { %p2881_p4 = scmp.lt.s32.totalorder %s600_s10, %s2879_s15  ;;  %p2882_p13 = scmp.lt.s32.totalorder %s2880_s16, %s2873_s14 }
  0x3a   : > { %p2877_p11 = pneg %p2876_p9 }
  0x3b   : > { %p2883_p12 = por %p2882_p13, %p2881_p4 }
  0x3d   : > { %p2884_p10 = pnand %p2883_p12, %p2877_p11 }
  0x3f   : > { %2887 = shalt.err (!%p2884_p10)
}
  0x40   : > { %2706 = dma.hbm_to_vmem [thread:$0]  (!%p3256_p3), %s597_s12, 128, %s600_s10, %s589_s21  }
  0x41   : > { %p739_p8 = scmp.lt.s32.totalorder %s3040_s3, 5  ;;  %s395_s17 = sadd.s32 1, %s3008_s20 }
  0x42   : > { %s47_s28 = sadd.s32 1, %s3032_s24  ;;  %s688_s0 = sand.u32 1, %s3008_s20  }
  0x43   : > { %p3275_p1 = pnand %p2471_p2, %p739_p8  ;;  %p48_p10 = scmp.ge.s32.totalorder %s47_s28, 2 }
  0x44   : > { %s2468_s26 = sshll.u32 %s688_s0, 4  ;;  %s2542_s27 = sshll.u32 %s3032_s24, 8 }
  0x45   : > { %s3833_s28 = smov (%p48_p10, %s47_s28), 0  ;;  %s3765_s10 = sadd.s32 1, %s3036_s25 }
  0x46   : > { %3764 = sst [smem:[#allocation23_spill]] %s3833_s28  ;;  %s3835_s10 = smov (!%p48_p10, %s3765_s10), %s3036_s25 }
  0x47   : > { %s392_s12 = ssub.s32 %s3032_s24, %s3833_s28  ;;  %p52_p12 = scmp.ge.s32.totalorder %s3835_s10, 2 }
  0x48   : > { %p393_p13 = scmp.eq.s32.totalorder %s392_s12, 0  ;;  %s3766_s13 = sld [smem:[#allocation41_spill]] }
  0x49   : > { %s692_s15 = scalar_lea.vmem [#allocation6], %s2468_s26  ;;  %s3837_s10 = smov (%p52_p12, %s3835_s10), 0 }
  0x4a   : > { %s699_s16 = sshll.u32 %s692_s15, 4  ;;  %3767 = sst [smem:[#allocation24_spill]] %s3837_s10  ;;  %s700_s16 = int_to_ptr.vmem [resolvable:$true] %s699_s16 }
  0x4b   : > { %s3297_s3 = scalar_select %p393_p13, %s3008_s20, %s395_s17  }
  0x4c   : > { %s54_s9 = ssub.s32 %s3036_s25, %s3837_s10  ;;  %s3769_s8 = sadd.s32 1, %s3020_s22 }
  0x4d   : > { %3768 = sst [smem:[#allocation25_spill]] %s3297_s3  ;;  %p55_p3 = scmp.eq.s32.totalorder %s54_s9, 0 }
  0x4e   : > { %s3292_s11 = scalar_lea.hbm %s3766_s13, %s2542_s27  ;;  %s689_s28 = scalar_lea.sflag [#allocation7], %s688_s0 }
  0x4f   : > { %s3304_s7 = scalar_select %p55_p3, %s3020_s22, %s3769_s8  }
  0x50   : > { %p2890_p2 = pneg %p3262_p0  ;;  %s2901_s12 = scalar_lea.vmem %s700_s16, 256 }
  0x51   : > { %3770 = sst [smem:[#allocation26_spill]] %s3304_s7  ;;  %p2902_p5 = scmp.ne.s32.totalorder %s700_s16, %s2901_s12 }
  0x52   : > { %s3043_s26 = smov [#allocation6]  }
  0x53   : > { %p2904_p7 = pnand %p2902_p5, %p2890_p2  ;;  %s2906_s27 = sshll.u32 %s3043_s26, 4  ;;  %s2907_s27 = int_to_ptr.vmem [resolvable:$false] %s2906_s27 }
  0x54   : > { %s2908_s21 = scalar_lea.vmem %s2907_s27, 512  ;;  %p2909_p11 = scmp.lt.s32.totalorder %s700_s16, %s2907_s27 }
  0x55   : > { %p2905_p9 = pneg %p2904_p7  ;;  %p2910_p4 = scmp.lt.s32.totalorder %s2908_s21, %s2901_s12 }
  0x57   : > { %p2911_p8 = por %p2910_p4, %p2909_p11 }
  0x59   : > { %p2912_p10 = pnand %p2911_p8, %p2905_p9 }
  0x5b   : > { %2915 = shalt.err (!%p2912_p10)
}
  0x5c   : > { %s3044_s9 = smov 64   ;;  %s3045_s8 = smov 4  }
  0x5d   : > { %2709 = dma.hbm_to_vmem [thread:$0]  (!%p3262_p0), %s3292_s11, 256, %s700_s16, %s689_s28, %s3044_s9, %s3044_s9, %s3045_s8  }
  0x5e   : > { %743 = sbr.rel (%p3275_p1) target bundleno = 3042 (0xbe2), region = 96 }
  0x63   : > { %s3314_s17 = sand.u32 1, %s3016_s1  }
  0x64   : > { %s3713_s0 = sshll.u32 %s3314_s17, 3  ;;  %s746_s14 = scalar_lea.sflag [#allocation4], %s3314_s17 }
  0x65   : > { %s3320_s15 = scalar_lea.vmem [#allocation3], %s3713_s0 }
  0x66   : > { %2987 = dma.done.wait (%p3227_p6), %s746_s14, 128  }
  0x67   : > { %2989 = vsyncadd (%p3227_p6), %s746_s14, 4294967168  ;;  %s754_s18 = sand.u32 1, %s3004_s30   ;;  %p3772_p0 = scmp.ne.s32.totalorder %s3755_s29, 0 }
  0x68   : > { %s3327_s19 = sshll.u32 %s754_s18, 4  ;;  %s755_s28 = scalar_lea.sflag [#allocation7], %s754_s18 }
  0x69   : > { %3771 = sst [smem:[#allocation27_spill]] %s3327_s19 }
  0x6a   : > { %2991 = dma.done.wait (%p3772_p0), %s755_s28, 256  }
  0x6b   : > { %2993 = vsyncadd (%p3772_p0), %s755_s28, 4294967040  ;;  %p881_p1 = scmp.lt.s32.totalorder %s3024_s2, 1  ;;  %s3774_s8 = sld [smem:[#allocation30_spill]] }
  0x6c   : > { %s3775_s11 = sld [smem:[#allocation32_spill]]  ;;  %p2487_p6 = scmp.ne.s32.totalorder %s3024_s2, 0 }
  0x6d   : > { %s3336_s16 = scalar_select %p881_p1, %s3024_s2, 1 }
  0x6e   : > { %s3776_s5 = sld [smem:[#allocation33_spill]] }
  0x6f   : > { %s2543_s23 = sshll.u32 %s3336_s16, 4  ;;  %s3778_s18 = sld [smem:[#allocation35_spill]] }
  0x70   : > { %s2547_s10 = sshll.u32 %s3336_s16, 5  ;;  %s3781_s3 = sld [smem:[#allocation37_spill]] }
  0x71   : > { %s3346_s14 = scalar_lea.vmem %s3774_s8, %s2543_s23  ;;  %s3785_s22 = sld [smem:[#allocation42_spill]] }
  0x72   : > { %s3351_s0 = scalar_lea.vmem %s3775_s11, %s2543_s23  ;;  %s3786_s1 = sld [smem:[#allocation43_spill]] }
  0x73   : > { %s3787_s20 = sld [smem:[#allocation44_spill]] }
  0x74   : > { %s3360_s29 = scalar_lea.vmem %s3776_s5, %s2543_s23  ;;  %s3788_s8 = sld [smem:[#allocation45_spill]] }
  0x75   : > { %s3369_s28 = scalar_lea.vmem %s3778_s18, %s2543_s23  ;;  %s3789_s23 = sld [smem:[#allocation46_spill]] }
  0x76   : > { %3779 = sst [smem:[#allocation28_spill]] %s3369_s28  ;;  %s917_s12 = scalar_lea.vmem %s3781_s3, %s2547_s10 }
  0x77   : > { %s929_s11 = scalar_lea.vmem %s3785_s22, %s3336_s16  ;;  %s3790_s18 = sshll.u32 %s3314_s17, 3 }
  0x78   : > { %s3398_s25 = scalar_lea.vmem %s3786_s1, %s2547_s10  ;;  %s3414_s28 = scalar_lea.vmem [#allocation8], %s3790_s18 }
  0x79   : > { %s937_s26 = scalar_lea.vmem %s3787_s20, %s3336_s16  ;;  %948 = sbr.rel (%p2487_p6) target bundleno = 128 (0x80), region = 108 }
  0x7a   : > { %s940_s9 = scalar_lea.vmem %s3788_s8, %s3336_s16 }
  0x7b   : > { %s943_s27 = scalar_lea.vmem %s3789_s23, %s3336_s16 }
  0x7e   : > { %v949_v0 = vld [vmem:[%s3320_s15] sm:$0xff]  ;;  %vm950_vm0 = vcmask 261120  }
  0x7f   : > { %951 = vst.msk [vmem:[#allocation2] sm:$0xff] %vm950_vm0, %v949_v0 }
  0x80 PF: > { %v957_v1 = vld [vmem:[%s917_s12 + $0x18] sm:$0xff]  ;;  %v3046_v2 = vmov 0.0   ;;  %v956_v3 = vld [vmem:[%s917_s12 + $0x10] sm:$0xff]  ;;  %v955_v4 = vld [vmem:[%s917_s12 + $0x8] sm:$0xff]  ;;  %vm3047_vm1 = vmmov 0   ;;  %vm965_vm2 = vcmask 261120  }
  0x81   : > { %2590 = vmatprep.subr.mxu0 %v3046_v2  ;;  %2601 = vmatprep.subr.bf16.mxu1 %v3046_v2  ;;  %v2826_v5 = vld [vmem:[%s3346_s14 + $0x8] sm:$0xff]   ;;  %v954_v6 = vld [vmem:[%s917_s12] sm:$0xff]  ;;  %vm1293_vm3 = vcmask 64512   ;;  %s3794_s12 = sld [smem:[#allocation34_spill]]  ;;  %s3048_s7 = smov 120   ;;  %vm1387_vm4 = vcmask 1043456  }
  0x82   : > { %2591 = vmatpush3.msra.mxu0 %v957_v1  ;;  %2598 = vmatprep.mubr.msk.f32.mxu0 %vm3047_vm1, %v3046_v2  ;;  %v2828_v7 = vld [vmem:[%s3346_s14] sm:$0xff]   ;;  %v2827_v9 = vld [vmem:[%s3351_s0 + $0x8] sm:$0xff]   ;;  %s3792_s14 = sld [smem:[#allocation31_spill]]  ;;  %s3049_s22 = smov 112   ;;  %vm1233_vm5 = vcmask 31744  }
  0x83   : > { %2592 = vmatprep.subr.mxu0 %v3046_v2  ;;  %2605 = vmatprep.mubr.msk.bf16.mxu1 %vm3047_vm1, %v3046_v2  ;;  %v2830_v11 = vld [vmem:[%s3360_s29 + $0x8] sm:$0xff]   ;;  %v2829_v12 = vld [vmem:[%s3351_s0] sm:$0xff]   ;;  %s3791_s0 = scalar_lea.vmem %s3687_s4, %s3336_s16  ;;  %s3050_s1 = smov 104  }
  0x84   : > { %2593 = vmatpush3.msra.mxu0 %v956_v3  ;;  %2602 = vmatpush3.bf16.msra.mxu1 %v2826_v5  ;;  %v2831_v13 = vld [vmem:[%s3360_s29] sm:$0xff]   ;;  %s3796_s20 = sld [smem:[#allocation38_spill]]  ;;  %s3055_s24 = smov 8  }
  0x85   : > { %2594 = vmatprep.subr.mxu0 %v3046_v2  ;;  %2603 = vmatprep.subr.bf16.mxu1 %v3046_v2  ;;  %v2494_v18 = vld [vmem:[%s3791_s0] ss:$0 sm:$0xff]  ;;  %s3800_s8 = sld [smem:[#allocation28_spill]]  ;;  %s3056_s23 = smov 16  }
  0x86   : > { %v3428_v8 = vld [vmem:[#allocation2] sm:$0xff]  ;;  %2595 = vmatpush3.msra.mxu0 %v955_v4  ;;  %s3057_s6 = smov 24   ;;  %s3801_s15 = sld [smem:[#allocation36_spill]] }
  0x87   : > { %2596 = vmatprep.subr.mxu0 %v3046_v2  ;;  %v953_v10 = vpack.c.bf16 %v3428_v8, %v3428_v8  ;;  %s3795_s18 = scalar_lea.vmem %s3794_s12, %s3336_s16  ;;  %s3808_s3 = sld [smem:[#allocation40_spill]] }
  0x88   : > { %2597 = vmatpush3.msra.mxu0 %v954_v6  ;;  %2604 = vmatpush3.bf16.msra.mxu1 %v2828_v7  ;;  %s3793_s29 = scalar_lea.vmem %s3792_s14, %s3336_s16  ;;  %v2498_v23 = vld [vmem:[%s3795_s18] ss:$0 sm:$0xff]  ;;  %s3803_s14 = sld [smem:[#allocation27_spill]] }
  0x89   : > { %2599 = vmatmul.mubr.msk.f32.vlgmr.msra.gmra.mxu0 %vm965_vm2, %v3428_v8  ;;  %2609 = vmatprep.subr.bf16.mxu0 %v3046_v2  ;;  %v2490_v20 = vld [vmem:[%s3793_s29] ss:$0 sm:$0xff]  ;;  %s3806_s18 = sld [smem:[#allocation39_spill]]  ;;  %p2537_p12 = scmp.ne.s32.totalorder %s3024_s2, 1 }
  0x8a   : > { %2610 = vmatpush3.bf16.msra.mxu0 %v2827_v9  ;;  %2617 = vmatprep.subr.bf16.mxu1 %v3046_v2  ;;  %s3797_s21 = scalar_lea.vmem %s3796_s20, %s3336_s16 }
  0x8b   : > { %2611 = vmatprep.subr.bf16.mxu0 %v3046_v2  ;;  %2606 = vmatmul.mubr.msk.bf16.vlgmr.msra.gmra.mxu1 %vm965_vm2, %v953_v10 }
  0x8c   : > { %2613 = vmatprep.mubr.msk.bf16.mxu0 %vm3047_vm1, %v3046_v2  ;;  %2618 = vmatpush3.bf16.msra.mxu1 %v2830_v11  ;;  %s3802_s19 = scalar_lea.vmem %s3801_s15, %s3336_s16 }
  0x8d   : > { %2619 = vmatprep.subr.bf16.mxu1 %v3046_v2  ;;  %2621 = vmatprep.mubr.msk.bf16.mxu1 %vm3047_vm1, %v3046_v2  ;;  %s3809_s5 = scalar_lea.vmem %s3808_s3, %s3336_s16 }
  0x8e   : > { %2612 = vmatpush3.bf16.msra.mxu0 %v2829_v12  ;;  %s3804_s29 = scalar_lea.vmem [#allocation6], %s3803_s14 }
  0x8f   : > { %2625 = vmatprep.subr.mxu0 %v3046_v2  ;;  %s3805_s13 = smov %s3804_s29 }
  0x90   : > { %2620 = vmatpush3.bf16.msra.mxu1 %v2831_v13 }
  0x91   : > { %2614 = vmatmul.mubr.msk.bf16.vlgmr.msra.gmra.mxu0 %vm965_vm2, %v953_v10  ;;  %2630 = vmatprep.subr.bf16.mxu1 %v3046_v2 }
  0x92   : > { %2627 = vmatprep.mubr.msk.f32.mxu0 %vm3047_vm1, %v3046_v2 }
  0x93   : > { %2622 = vmatmul.mubr.msk.bf16.vlgmr.msra.gmra.mxu1 %vm965_vm2, %v953_v10 }
  0x94   : > { %2632 = vmatprep.mubr.msk.bf16.mxu1 %vm3047_vm1, %v3046_v2 }
 0x149   : > { %v3457_v14 = vpop.f32.mrf.mxu0 }
 0x14b   : > { %v2600_v15 = vpop.f32.mrf.mxu0  ;;  %v1099_v16 = vpop.f32.mrf.mxu1 }
 0x14c   : > { %v1100_v25 = vadd.f32 %v2490_v20, %v1099_v16 }
 0x14d   : > { %v2607_v17 = vpop.f32.mrf.mxu1 }
 0x14e   : > { %v3051_v17 = vmov 0  }
 0x14f   : > { %v1102_v19 = vpop.f32.mrf.mxu1  ;;  %2818 = vset.pattern.permute.xlu1 %v3051_v17 }
 0x151   : > { %v1162_v21 = vpop.f32.mrf.mxu0  ;;  %v2608_v22 = vpop.f32.mrf.mxu1 }
 0x152   : > { %v1163_v24 = vadd.f32 %v2494_v18, %v1162_v21  ;;  %v3052_v18 = vmov 2  }
 0x153   : > { %v2615_v26 = vpop.f32.mrf.mxu0  ;;  %v1225_v27 = vpop.f32.mrf.mxu1  ;;  %2820 = vset.pattern.permute.xlu0 %v3052_v18 }
 0x154   : > { %1439 = vrot.lane.b32.xlu0 %v1163_v24, %s3048_s7  ;;  %2626 = vmatpush3.xpose.msk.msra.mxu0 %vm1293_vm3, %v1163_v24  ;;  %v1226_v28 = vadd.f32 %v2498_v23, %v1225_v27  ;;  %v2488_v26 = vld [vmem:[%s3797_s21] ss:$0 sm:$0xff] }
 0x155   : > { %v1165_v29 = vpop.f32.mrf.mxu0  ;;  %2636 = vmatprep.subr.mxu0 %v3046_v2  ;;  %v2623_v30 = vpop.f32.mrf.mxu1  ;;  %v1036_v27 = vadd.f32 %v2488_v26, %v3457_v14 }
 0x156   : > { %v3477_v33 = vpack.c.bf16 %v1226_v28, %v1226_v28 }
 0x157   : > { %v2616_v31 = vpop.f32.mrf.mxu0  ;;  %2628 = vmatmul.mubr.msk.f32.vlgmr.msra.gmra.mxu0 %vm1293_vm3, %v1100_v25  ;;  %v1228_v32 = vpop.f32.mrf.mxu1  ;;  %v1234_v28 = vsel %vm1233_vm5, %v1036_v27, 0.0 }
 0x158   : > { %1437 = vrot.lane.b32.xlu0 %v1100_v25, %s3048_s7  ;;  %2638 = vmatprep.mubr.msk.f32.mxu0 %vm3047_vm1, %v3046_v2  ;;  %v1389_v47 = vsel %vm1387_vm4, %v3477_v33, 0  ;;  %v1235_v30 = vrot.slane %v1234_v28, 4 }
 0x159   : > { %v2624_v34 = vpop.f32.mrf.mxu1  ;;  %2631 = vmatpush3.bf16.msra.mxu1 %v1389_v47 }
 0x15a   : > { %2652 = vmatprep.subr.bf16.mxu1 %v3046_v2 }
 0x15c   : > { %1529 = vrot.lane.b32.xlu0 %v3477_v33, %s3048_s7  ;;  %s3807_s7 = scalar_lea.vmem %s3806_s18, %s3336_s16 }
 0x160   : > { %1582 = vrot.lane.b32.xlu0 %v1100_v25, %s3049_s22 }
 0x164   : > { %1728 = vrot.lane.b32.xlu0 %v1163_v24, %s3050_s1 }
 0x168   : > { %1726 = vrot.lane.b32.xlu0 %v1100_v25, %s3050_s1 }
 0x1c6   : > { %v1440_v35 = vpop.permute.xlu0 %1439 }
 0x1c7   : > { %2637 = vmatpush3.xpose.msk.msra.mxu0 %vm1293_vm3, %v1440_v35  ;;  %v1236_v35 = vadd.f32 %v1235_v30, %v1234_v28 }
 0x1c8   : > { %2641 = vmatprep.subr.bf16.mxu0 %v3046_v2 }
 0x1ca   : > { %v1438_v36 = vpop.permute.xlu0 %1437 }
 0x1cb   : > { %2639 = vmatmul.mubr.msk.f32.vlgmr.msra.gmra.mxu0 %vm1293_vm3, %v1438_v36 }
 0x1cc   : > { %2643 = vmatprep.mubr.msk.bf16.mxu0 %vm3047_vm1, %v3046_v2 }
 0x1ce   : > { %v1530_v37 = vpop.permute.xlu0 %1529 }
 0x1cf   : > { %v1535_v38 = vsel %vm1387_vm4, %v1530_v37, 0 }
 0x1d0   : > { %2642 = vmatpush3.bf16.msra.mxu0 %v1535_v38 }
 0x1d1   : > { %2647 = vmatprep.subr.mxu0 %v3046_v2 }
 0x1d2   : > { %v1583_v57 = vpop.permute.xlu0 %1582 }
 0x1d6   : > { %v1729_v59 = vpop.permute.xlu0 %1728 }
 0x1da   : > { %v1727_v60 = vpop.permute.xlu0 %1726 }
 0x217   : > { %v1366_v39 = vpop.f32.mrf.mxu0 }
 0x218   : > { %v1370_v40 = vmul.f32 0.35355338, %v1366_v39  ;;  %v1237_v39 = vrot.slane %v1236_v35, 2 }
 0x219   : > { %v2629_v41 = vpop.f32.mrf.mxu0 }
 0x21a   : > { %v1371_v42 = vsel %vm1293_vm3, %v1370_v40, -inf  ;;  %v1238_v14 = vadd.f32 %v1237_v39, %v1236_v35  ;;  %v2519_v39 = vld [vmem:[%s3802_s19] ss:$0 sm:$0xff] }
 0x21b   : > { %1372 = vmax.xlane.f32.xlu0 %v1371_v42  ;;  %v3053_v42 = vmov 1  }
 0x28b   : > { %v1511_v43 = vpop.f32.mrf.mxu0 }
 0x28c   : > { %v1515_v44 = vmul.f32 0.35355338, %v1511_v43  ;;  %v3054_v43 = vmov 3  }
 0x28d   : > { %v2640_v45 = vpop.f32.mrf.mxu0 }
 0x28e   : > { %v1516_v46 = vsel %vm1293_vm3, %v1515_v44, -inf }
 0x28f   : > { %1517 = vmax.xlane.f32.xlu1 %v1516_v46 }
 0x2a4   : > { %v1373_v61 = vpop.xlane.xlu0 %1372 }
 0x2a5   : > { %v1374_v62 = vsub.f32 %v1370_v40, %v1373_v61  ;;  %v1239_v40 = vrot.slane %v1238_v14, 1 }
 0x2a7   : > { %v1375_v63 = vmul.f32 1.442695, %v1374_v62  ;;  %v1240_v41 = vadd.f32 %v1239_v40, %v1238_v14 }
 0x318   : > { %v1518_v48 = vpop.xlane.xlu1 %1517 }
 0x319   : > { %v1519_v49 = vsub.f32 %v1515_v44, %v1518_v48  ;;  %v1231_v44 = vlaneseq }
 0x31b   : > { %v1520_v50 = vmul.f32 1.442695, %v1519_v49  ;;  %v1232_v46 = vand.u32 127, %v1231_v44 }
 0x31d   : > { %2840 = vpow2.f32 %v1520_v50  ;;  %vm1248_vm6 = vcmp.gt.s32.totalorder %v1232_v46, 0  ;;  %vm1260_vm10 = vcmp.gt.s32.totalorder %v1232_v46, 1  ;;  %vm1272_vm0 = vcmp.gt.s32.totalorder %v1232_v46, 2 }
 0x32a   : > { %v2841_v51 = vpop.eup %2840 }
 0x32b   : > { %v1522_v52 = vsel %vm1293_vm3, %v2841_v51, 0.0 }
 0x32c   : > { %1523 = vadd.xlane.f32.xlu1 %v1522_v52 }
 0x33d   : > { %1584 = vrot.lane.b32.xlu1 %v1163_v24, %s3049_s22 }
 0x3b5   : > { %v1524_v53 = vpop.xlane.xlu1 %1523 }
 0x3b6   : > { %2842 = vrcp.f32 %v1524_v53  ;;  %v2838_v53 = vld [vmem:[%s3398_s25 + $0x8] sm:$0xff]  }
 0x3b7   : > { %2844 = vpow2.f32 %v1375_v63 }
 0x3b9   : > { %v1585_v58 = vpop.permute.xlu1 %1584 }
 0x3c3   : > { %v2843_v54 = vpop.eup %2842 }
 0x3c4   : > { %v1526_v55 = vmul.f32 %v2843_v54, %v2841_v51  ;;  %v2845_v15 = vpop.eup %2844 }
 0x3c5   : > { %v1377_v16 = vsel %vm1293_vm3, %v2845_v15, 0.0 }
 0x3c6   : > { %v1527_v56 = vpack.c.bf16 %v1526_v55, %v1526_v55 }
 0x3c8   : > { %2644 = vmatmul.mubr.msk.bf16.vlgmr.msra.gmra.mxu0 %vm1293_vm3, %v1527_v56 }
 0x3c9   : > { %2648 = vmatpush3.xpose.msk.msra.mxu0 %vm1293_vm3, %v1585_v58  ;;  %2649 = vmatprep.mubr.msk.f32.mxu0 %vm3047_vm1, %v3046_v2 }
 0x3ca   : > { %2658 = vmatprep.subr.mxu0 %v3046_v2 }
 0x3d0   : > { %2650 = vmatmul.mubr.msk.f32.vlgmr.msra.gmra.mxu0 %vm1293_vm3, %v1583_v57 }
 0x3d1   : > { %2659 = vmatpush3.xpose.msk.msra.mxu0 %vm1293_vm3, %v1729_v59  ;;  %2660 = vmatprep.mubr.msk.f32.mxu0 %vm3047_vm1, %v3046_v2 }
 0x3d2   : > { %2663 = vmatprep.subr.bf16.mxu0 %v3046_v2 }
 0x3d4   : > { %2661 = vmatmul.mubr.msk.f32.vlgmr.msra.gmra.mxu0 %vm1293_vm3, %v1727_v60 }
 0x3d5   : > { %2665 = vmatprep.mubr.msk.bf16.mxu0 %vm3047_vm1, %v3046_v2 }
 0x488   : > { %v3512_v0 = vpop.f32.mrf.mxu0 }
 0x48a   : > { %v2645_v1 = vpop.f32.mrf.mxu0 }
 0x48c   : > { %v1574_v3 = vpop.f32.mrf.mxu0 }
 0x48e   : > { %v2646_v4 = vpop.f32.mrf.mxu0 }
 0x490   : > { %v1656_v5 = vpop.f32.mrf.mxu0 }
 0x491   : > { %v1660_v6 = vmul.f32 0.35355338, %v1656_v5 }
 0x492   : > { %v2651_v7 = vpop.f32.mrf.mxu0 }
 0x493   : > { %v1661_v9 = vsel %vm1293_vm3, %v1660_v6, -inf }
 0x494   : > { %1662 = vmax.xlane.f32.xlu1 %v1661_v9  ;;  %v1800_v10 = vpop.f32.mrf.mxu0 }
 0x495   : > { %v1804_v11 = vmul.f32 0.35355338, %v1800_v10 }
 0x496   : > { %v2662_v12 = vpop.f32.mrf.mxu0 }
 0x497   : > { %v1805_v13 = vsel %vm1293_vm3, %v1804_v11, -inf }
 0x498   : > { %1806 = vmax.xlane.f32.xlu0 %v1805_v13  ;;  %v2832_v13 = vld [vmem:[%s3800_s8 + $0x8] sm:$0xff]  }
 0x49c   : > { %1378 = vadd.xlane.f32.xlu0 %v1377_v16 }
 0x51d   : > { %v1663_v19 = vpop.xlane.xlu1 %1662 }
 0x51e   : > { %v1664_v20 = vsub.f32 %v1660_v6, %v1663_v19 }
 0x520   : > { %v1665_v21 = vmul.f32 1.442695, %v1664_v20 }
 0x521   : > { %v1807_v22 = vpop.xlane.xlu0 %1806 }
 0x522   : > { %2846 = vpow2.f32 %v1665_v21  ;;  %v1808_v23 = vsub.f32 %v1804_v11, %v1807_v22 }
 0x524   : > { %v1809_v24 = vmul.f32 1.442695, %v1808_v23 }
 0x525   : > { %v1379_v25 = vpop.xlane.xlu0 %1378 }
 0x526   : > { %2848 = vpow2.f32 %v1809_v24 }
 0x527   : > { %2850 = vrcp.f32 %v1379_v25 }
 0x52f   : > { %v2847_v29 = vpop.eup %2846 }
 0x530   : > { %v1667_v31 = vsel %vm1293_vm3, %v2847_v29, 0.0 }
 0x531   : > { %1668 = vadd.xlane.f32.xlu1 %v1667_v31 }
 0x533   : > { %v3525_v32 = vpop.eup %2848 }
 0x534   : > { %v2851_v34 = vpop.eup %2850  ;;  %v1811_v36 = vsel %vm1293_vm3, %v3525_v32, 0.0 }
 0x535   : > { %1812 = vadd.xlane.f32.xlu0 %v1811_v36  ;;  %v1381_v37 = vmul.f32 %v2851_v34, %v2845_v15 }
 0x537   : > { %v1382_v38 = vpack.c.bf16 %v1381_v37, %v1381_v37 }
 0x539   : > { %2633 = vmatmul.mubr.msk.bf16.vlgmr.msra.gmra.mxu1 %vm1293_vm3, %v1382_v38 }
 0x53a   : > { %2654 = vmatprep.mubr.msk.bf16.mxu1 %vm3047_vm1, %v3046_v2 }
 0x542   : > { %1673 = vrot.lane.b32.xlu1 %v3477_v33, %s3049_s22 }
 0x546   : > { %1243 = vperm.xlu1 %2818, %v1240_v41  }
 0x54a   : > { %2819 = vset.pattern.permute.xlu1 %v3053_v42 }
 0x54b   : > { %1255 = vperm.xlu1 %2819, %v1240_v41   ;;  %1817 = vrot.lane.b32.xlu0 %v3477_v33, %s3050_s1 }
 0x54f   : > { %2821 = vset.pattern.permute.xlu1 %v3054_v43  ;;  %1267 = vperm.xlu0 %2820, %v1240_v41  }
 0x550   : > { %1279 = vperm.xlu1 %2821, %v1240_v41  }
 0x554   : > { %2822 = vset.pattern.permute.xlu1 %v3053_v42 }
 0x5ba   : > { %v1669_v45 = vpop.xlane.xlu1 %1668 }
 0x5bb   : > { %2852 = vrcp.f32 %v1669_v45 }
 0x5be   : > { %v1674_v47 = vpop.permute.xlu1 %1673  ;;  %v1813_v48 = vpop.xlane.xlu0 %1812 }
 0x5bf   : > { %v1679_v49 = vsel %vm1387_vm4, %v1674_v47, 0  ;;  %2854 = vrcp.f32 %v1813_v48 }
 0x5c0   : > { %2653 = vmatpush3.bf16.msra.mxu1 %v1679_v49 }
 0x5c1   : > { %2669 = vmatprep.subr.bf16.mxu1 %v3046_v2 }
 0x5c2   : > { %v1244_v33 = vpop.permute.xlu1 %1243  ;;  %v1818_v50 = vpop.permute.xlu0 %1817 }
 0x5c3   : > { %vm1247_vm7 = vcmp.eq.f32.partialorder %v1244_v33, %v1240_v41  ;;  %v1823_v51 = vsel %vm1387_vm4, %v1818_v50, 0  ;;  %vm1246_vm8 = vcmp.gt.f32.partialorder %v1244_v33, %v1240_v41  ;;  %v2834_v50 = vld [vmem:[%s3804_s29 + $0x8] sm:$0xff]  }
 0x5c4   : > { %vm1249_vm9 = vmand %vm1247_vm7, %vm1248_vm6  ;;  %2664 = vmatpush3.bf16.msra.mxu0 %v1823_v51  ;;  %vm1284_vm6 = vcmp.gt.s32.totalorder %v1232_v46, 3  ;;  %v2836_v51 = vld [vmem:[%s3398_s25 + $0x18] sm:$0xff]  }
 0x5c5   : > { %2677 = vmatprep.subr.bf16.mxu0 %v3046_v2  ;;  %vm3541_vm11 = vmor %vm1246_vm8, %vm1249_vm9 }
 0x5c6   : > { %v1256_v52 = vpop.permute.xlu1 %1255  ;;  %v2502_v61 = vsel %vm3541_vm11, 1.0, %v3046_v2 }
 0x5c7   : > { %vm1258_vm12 = vcmp.gt.f32.partialorder %v1256_v52, %v1240_v41  ;;  %vm1259_vm13 = vcmp.eq.f32.partialorder %v1256_v52, %v1240_v41  ;;  %v2837_v52 = vld [vmem:[%s3398_s25 + $0x10] sm:$0xff]  }
 0x5c8   : > { %v2853_v54 = vpop.eup %2852  ;;  %vm1261_vm14 = vmand %vm1259_vm13, %vm1260_vm10 }
 0x5c9   : > { %vm1262_vm15 = vmor %vm1258_vm12, %vm1261_vm14  ;;  %v1671_v55 = vmul.f32 %v2853_v54, %v2847_v29  ;;  %vm1883_vm14 = vcmask 130048  }
 0x5ca   : > { %v2503_v56 = vsel %vm1262_vm15, 1.0, %v3046_v2  ;;  %v1268_v57 = vpop.permute.xlu0 %1267  ;;  %vm1885_vm15 = vcmask 195584  }
 0x5cb   : > { %vm1270_vm4 = vcmp.gt.f32.partialorder %v1268_v57, %v1240_v41  ;;  %vm1271_vm5 = vcmp.eq.f32.partialorder %v1268_v57, %v1240_v41  ;;  %v1280_v58 = vpop.permute.xlu1 %1279  ;;  %v1672_v59 = vpack.c.bf16 %v1671_v55, %v1671_v55  ;;  %v1265_v62 = vadd.f32 %v2503_v56, %v2502_v61 }
 0x5cc   : > { %v2855_v60 = vpop.eup %2854  ;;  %vm1273_vm7 = vmand %vm1271_vm5, %vm1272_vm0  ;;  %vm1282_vm8 = vcmp.gt.f32.partialorder %v1280_v58, %v1240_v41  ;;  %vm1283_vm9 = vcmp.eq.f32.partialorder %v1280_v58, %v1240_v41  ;;  %v2523_v58 = vld [vmem:[%s3807_s7] ss:$0 sm:$0xff] }
 0x5cd   : > { %vm1274_vm10 = vmor %vm1270_vm4, %vm1273_vm7  ;;  %2655 = vmatmul.mubr.msk.bf16.vlgmr.msra.gmra.mxu1 %vm1293_vm3, %v1672_v59  ;;  %v1815_v63 = vmul.f32 %v2855_v60, %v3525_v32  ;;  %v2524_v60 = vld [vmem:[%s3809_s5] ss:$0 sm:$0xff] }
 0x5ce   : > { %v2504_v1 = vsel %vm1274_vm10, 1.0, %v3046_v2  ;;  %vm1285_vm12 = vmand %vm1283_vm9, %vm1284_vm6  ;;  %2673 = vmatprep.mubr.msk.bf16.mxu1 %vm3047_vm1, %v3046_v2  ;;  %2670 = vmatpush3.bf16.msra.mxu1 %v2832_v13 }
 0x5cf   : > { %v1277_v3 = vadd.f32 %v2504_v1, %v1265_v62  ;;  %vm1286_vm13 = vmor %vm1282_vm8, %vm1285_vm12  ;;  %v1816_v4 = vpack.c.bf16 %v1815_v63, %v1815_v63  ;;  %2671 = vmatprep.subr.bf16.mxu1 %v3046_v2  ;;  %v2839_v63 = vld [vmem:[%s3398_s25] sm:$0xff]  }
 0x5d0   : > { %v2505_v5 = vsel %vm1286_vm13, 1.0, %v3046_v2  ;;  %v2525_v1 = vld [vmem:[%s929_s11] ss:$0 sm:$0xff] }
 0x5d1   : > { %v1289_v6 = vadd.f32 %v2505_v5, %v1277_v3  ;;  %2666 = vmatmul.mubr.msk.bf16.vlgmr.msra.gmra.mxu0 %vm1293_vm3, %v1816_v4 }
 0x5d2   : > { %2681 = vmatprep.mubr.msk.bf16.mxu0 %vm3047_vm1, %v3046_v2  ;;  %2678 = vmatpush3.bf16.msra.mxu0 %v2834_v50 }
 0x5d3   : > { %vm1290_vm11 = vcmp.lt.f32.partialorder %v1289_v6, 2.0  ;;  %2679 = vmatprep.subr.bf16.mxu0 %v3046_v2 }
 0x5d4   : > { %v2506_v7 = vsel %vm1290_vm11, 1.0, %v3046_v2 }
 0x5d5   : > { %1722 = vperm.xlu0 %2820, %v2506_v7   ;;  %1578 = vperm.xlu1 %2822, %v2506_v7  }
 0x5d9   : > { %2824 = vset.pattern.permute.xlu0 %v3051_v17  ;;  %2823 = vset.pattern.permute.xlu1 %v3054_v43  ;;  %v2833_v17 = vld [vmem:[%s3800_s8] sm:$0xff]  }
 0x5da   : > { %1433 = vperm.xlu0 %2824, %v2506_v7   ;;  %1866 = vperm.xlu1 %2823, %v2506_v7  }
 0x5db   : > { %2672 = vmatpush3.bf16.msra.mxu1 %v2833_v17 }
 0x5dc   : > { %2685 = vmatprep.subr.bf16.mxu1 %v3046_v2 }
 0x5de   : > { %2825 = vset.pattern.permute.xlu0 %v3054_v43 }
 0x5f9   : > { %v1425_v9 = vpop.f32.mrf.mxu1 }
 0x5fb   : > { %v2634_v10 = vpop.f32.mrf.mxu1 }
 0x5fc   : > { %v2529_v10 = vld [vmem:[%s937_s26] ss:$0 sm:$0xff] }
 0x5fd   : > { %v1428_v11 = vpop.f32.mrf.mxu1 }
 0x5ff   : > { %v2635_v12 = vpop.f32.mrf.mxu1 }
 0x650   : > { %v1579_v15 = vpop.permute.xlu1 %1578  ;;  %v1723_v18 = vpop.permute.xlu0 %1722 }
 0x651   : > { %v1581_v16 = vmul.f32 %v1579_v15, %v3512_v0 }
 0x653   : > { %1871 = vrot.lane.b32.xlu1 %v1581_v16, %s3055_s24 }
 0x655   : > { %v1867_v22 = vpop.permute.xlu1 %1866  ;;  %v1434_v30 = vpop.permute.xlu0 %1433 }
 0x656   : > { %v1436_v31 = vmul.f32 %v1434_v30, %v1425_v9  ;;  %v2536_v30 = vld [vmem:[%s943_s27] ss:$0 sm:$0xff] }
 0x68d   : > { %v1715_v19 = vpop.f32.mrf.mxu1 }
 0x68e   : > { %v1725_v20 = vmul.f32 %v1723_v18, %v1715_v19 }
 0x68f   : > { %v2656_v21 = vpop.f32.mrf.mxu1 }
 0x690   : > { %1875 = vrot.lane.b32.xlu1 %v1725_v20, %s3056_s23 }
 0x691   : > { %v1718_v23 = vpop.f32.mrf.mxu1  ;;  %v1859_v24 = vpop.f32.mrf.mxu0 }
 0x692   : > { %v1869_v25 = vmul.f32 %v1867_v22, %v1859_v24 }
 0x693   : > { %v2657_v26 = vpop.f32.mrf.mxu1  ;;  %v2667_v27 = vpop.f32.mrf.mxu0 }
 0x694   : > { %1879 = vrot.lane.b32.xlu0 %v1869_v25, %s3057_s6 }
 0x695   : > { %v1862_v0 = vpop.f32.mrf.mxu0 }
 0x697   : > { %v2668_v28 = vpop.f32.mrf.mxu0 }
 0x698   : > { %v2535_v28 = vld [vmem:[%s940_s9] ss:$0 sm:$0xff] }
 0x6c5   : > { %v1872_v29 = vpop.permute.xlu1 %1871 }
 0x6c6   : > { %v1882_v34 = vsel %vm1293_vm3, %v1436_v31, %v1872_v29 }
 0x702   : > { %v1876_v32 = vpop.permute.xlu1 %1875 }
 0x703   : > { %v1884_v35 = vsel %vm1883_vm14, %v1882_v34, %v1876_v32 }
 0x706   : > { %v1880_v36 = vpop.permute.xlu0 %1879 }
 0x707   : > { %v1886_v37 = vsel %vm1885_vm15, %v1884_v35, %v1880_v36 }
 0x708   : > { %v1887_v38 = vpack.c.bf16 %v1886_v37, %v1886_v37 }
 0x70a   : > { %2674 = vmatmul.mubr.msk.bf16.vlgmr.msra.gmra.mxu1 %vm965_vm2, %v1887_v38 }
 0x70b   : > { %2693 = vmatprep.mubr.msk.bf16.mxu1 %vm3047_vm1, %v3046_v2  ;;  %2686 = vmatpush3.bf16.msra.mxu1 %v2836_v51  ;;  %vm2092_vm1 = vcmask 523264  }
 0x70c   : > { %2687 = vmatprep.subr.bf16.mxu1 %v3046_v2 }
 0x70f   : > { %2688 = vmatpush3.bf16.msra.mxu1 %v2837_v52 }
 0x710   : > { %2689 = vmatprep.subr.bf16.mxu1 %v3046_v2 }
 0x713   : > { %2690 = vmatpush3.bf16.msra.mxu1 %v2838_v53 }
 0x714   : > { %2691 = vmatprep.subr.bf16.mxu1 %v3046_v2 }
 0x717   : > { %2692 = vmatpush3.bf16.msra.mxu1 %v2839_v63 }
 0x7ca   : > { %v1948_v14 = vpop.f32.mrf.mxu1 }
 0x7cb   : > { %v1949_v40 = vadd.f32 %v2519_v39, %v1948_v14 }
 0x7cc   : > { %v2675_v41 = vpop.f32.mrf.mxu1 }
 0x7cd   : > { %v1954_v42 = vadd.f32 %v1949_v40, %v3428_v8  ;;  %v2835_v8 = vld [vmem:[%s3805_s13] sm:$0xff]  }
 0x7ce   : > { %v1951_v43 = vpop.f32.mrf.mxu1  ;;  %2680 = vmatpush3.bf16.msra.mxu0 %v2835_v8 }
 0x7cf   : > { %v1957_v44 = vsel %vm965_vm2, %v1954_v42, 0.0 }
 0x7d0   : > { %1958 = vadd.xlane.f32.xlu1 %v1957_v44  ;;  %v2676_v45 = vpop.f32.mrf.mxu1 }
 0x859   : > { %v1959_v46 = vpop.xlane.xlu1 %1958 }
 0x85a   : > { %v1961_v47 = vmul.f32 0.03125, %v1959_v46 }
 0x85c   : > { %v1962_v48 = vsub.f32 %v1954_v42, %v1961_v47 }
 0x85e   : > { %v1963_v49 = vmul.f32 %v1962_v48, %v1962_v48 }
 0x860   : > { %v1964_v33 = vsel %vm965_vm2, %v1963_v49, 0.0 }
 0x861   : > { %1965 = vadd.xlane.f32.xlu0 %v1964_v33 }
 0x8ea   : > { %v1966_v54 = vpop.xlane.xlu0 %1965 }
 0x8eb   : > { %v1967_v55 = vmul.f32 0.03125, %v1966_v54 }
 0x8ed   : > { %v1968_v56 = vadd.f32 1e-05, %v1967_v55 }
 0x8ef   : > { %2856 = vrsqrt.f32 %v1968_v56 }
 0x8fc   : > { %v2857_v57 = vpop.eup %2856 }
 0x8fd   : > { %v1970_v59 = vmul.f32 %v2857_v57, %v1962_v48 }
 0x8ff   : > { %v1977_v61 = vmul.f32 %v2523_v58, %v1970_v59 }
 0x901   : > { %v1984_v62 = vadd.f32 %v2524_v60, %v1977_v61 }
 0x903   : > { %v1985_v2 = vpack.c.bf16 %v1984_v62, %v1984_v62 }
 0x905   : > { %2682 = vmatmul.mubr.msk.bf16.vlgmr.msra.gmra.mxu0 %vm965_vm2, %v1985_v2 }
 0x9c5   : > { %v2046_v3 = vpop.f32.mrf.mxu0 }
 0x9c6   : > { %v2047_v4 = vadd.f32 %v2525_v1, %v2046_v3 }
 0x9c7   : > { %v2683_v5 = vpop.f32.mrf.mxu0 }
 0x9c8   : > { %v2052_v6 = vpack.c.bf16 %v2047_v4, %v2047_v4 }
 0x9c9   : > { %v2049_v7 = vpop.f32.mrf.mxu0 }
 0x9ca   : > { %2694 = vmatmul.mubr.msk.bf16.vlgmr.msra.gmra.mxu1 %vm2092_vm1, %v2052_v6 }
 0x9cb   : > { %v2684_v9 = vpop.f32.mrf.mxu0 }
 0xa8a   : > { %v2130_v11 = vpop.f32.mrf.mxu1 }
 0xa8b   : > { %v2131_v12 = vadd.f32 %v2529_v10, %v2130_v11 }
 0xa8c   : > { %v2695_v13 = vpop.f32.mrf.mxu1 }
 0xa8d   : > { %v2136_v15 = vmax.f32 %v2131_v12, 0.0 }
 0xa8e   : > { %v2133_v16 = vpop.f32.mrf.mxu1 }
 0xa8f   : > { %v2137_v17 = vadd.f32 %v2136_v15, %v1984_v62 }
 0xa90   : > { %v2696_v18 = vpop.f32.mrf.mxu1 }
 0xa91   : > { %v2140_v19 = vsel %vm965_vm2, %v2137_v17, 0.0 }
 0xa92   : > { %2141 = vadd.xlane.f32.xlu0 %v2140_v19 }
 0xb1b   : > { %v2142_v20 = vpop.xlane.xlu0 %2141 }
 0xb1c   : > { %v2143_v21 = vmul.f32 0.03125, %v2142_v20 }
 0xb1e   : > { %v2144_v22 = vsub.f32 %v2137_v17, %v2143_v21 }
 0xb20   : > { %v2145_v23 = vmul.f32 %v2144_v22, %v2144_v22 }
 0xb22   : > { %v2146_v24 = vsel %vm965_vm2, %v2145_v23, 0.0 }
 0xb23   : > { %2147 = vadd.xlane.f32.xlu1 %v2146_v24 }
 0xbac   : > { %v2148_v25 = vpop.xlane.xlu1 %2147 }
 0xbad   : > { %v2149_v26 = vmul.f32 0.03125, %v2148_v25 }
 0xbaf   : > { %v2150_v27 = vadd.f32 1e-05, %v2149_v26 }
 0xbb1   : > { %2858 = vrsqrt.f32 %v2150_v27 }
 0xbbe   : > { %v2859_v0 = vpop.eup %2858 }
 0xbbf   : > { %v2152_v29 = vmul.f32 %v2859_v0, %v2144_v22 }
 0xbc1   : > { %v2159_v31 = vmul.f32 %v2535_v28, %v2152_v29  ;;  %2171 = sbr.rel (%p2537_p12) target bundleno = 3015 (0xbc7), region = 112 }
 0xbc3   : > { %v2166_v32 = vadd.f32 %v2536_v30, %v2159_v31 }
 0xbc5   : > { %2167 = vst.msk [vmem:[#allocation2] sm:$0xff] %vm965_vm2, %v2166_v32 }
 0xbc6   : > { %2172 = vst.msk [vmem:[%s3414_s28] sm:$0xff] %vm965_vm2, %v2166_v32 }
 0xbc7 PF: > { %s3814_s19 = sld [smem:[#allocation17_spill]]  ;;  %s2187_s10 = sshll.u32 %s3414_s28, 4  ;;  %s2188_s10 = int_to_ptr.vmem [resolvable:$true] %s2187_s10 }
 0xbc8   : > { %s3815_s9 = sld [smem:[#allocation21_spill]]  ;;  %s2174_s12 = scalar_lea.sflag [#allocation5], %s3314_s17 }
 0xbc9   : > { %s3816_s16 = sld [smem:[#allocation47_spill]]  ;;  %s2916_s18 = scalar_lea.vmem %s2188_s10, 128 }
 0xbca   : > { %p2917_p13 = scmp.ne.s32.totalorder %s2188_s10, %s2916_s18  ;;  %s3058_s2 = smov [#allocation8]  }
 0xbcb   : > { %s2920_s7 = sshll.u32 %s3058_s2, 4  ;;  %s2921_s7 = int_to_ptr.vmem [resolvable:$false] %s2920_s7 }
 0xbcc   : > { %s2922_s22 = scalar_lea.vmem %s2921_s7, 256  ;;  %p2923_p7 = scmp.lt.s32.totalorder %s2188_s10, %s2921_s7 }
 0xbcd   : > { %s2539_s14 = sshll.u32 %s3814_s19, 7  ;;  %p2924_p9 = scmp.lt.s32.totalorder %s2922_s22, %s2916_s18 }
 0xbce   : > { %p3817_p3 = scmp.ne.s32.totalorder %s3815_s9, 0 }
 0xbcf   : > { %s2185_s27 = scalar_lea.hbm %s3816_s16, %s2539_s14  ;;  %p2925_p11 = por %p2924_p9, %p2923_p7 }
 0xbd0   : > { %p2918_p2 = pnand %p2917_p13, %p3817_p3 }
 0xbd2   : > { %p2919_p5 = pneg %p2918_p2 }
 0xbd4   : > { %p2926_p4 = pnand %p2925_p11, %p2919_p5 }
 0xbd6   : > { %2929 = shalt.err (!%p2926_p4)
}
 0xbd7   : > { %s2930_s1 = scalar_lea.hbm %s2185_s27, 128  ;;  %s2934_s3 = scalar_lea.hbm %s3816_s16, 256 }
 0xbd8   : > { %p2931_p8 = scmp.ne.s32.totalorder %s2185_s27, %s2930_s1  ;;  %p2935_p1 = scmp.lt.s32.totalorder %s2185_s27, %s3816_s16 }
 0xbd9   : > { %p2936_p6 = scmp.lt.s32.totalorder %s2934_s3, %s2930_s1 }
 0xbda   : > { %p2932_p10 = pnand %p2931_p8, %p3817_p3 }
 0xbdb   : > { %p2937_p12 = por %p2936_p6, %p2935_p1 }
 0xbdc   : > { %p2933_p0 = pneg %p2932_p10 }
 0xbde   : > { %p2938_p13 = pnand %p2937_p12, %p2933_p0 }
 0xbe0   : > { %2941 = shalt.err (!%p2938_p13)
}
 0xbe1   : > { %2701 = dma.vmem_to_hbm [thread:$0]  (%p3817_p3), %s2188_s10, 128, %s2185_s27, %s2174_s12  }
 0xbe2 PF: > { %s3818_s21 = sld [smem:[#allocation20_spill]] }
 0xbe3   : > { %s3819_s8 = sld [smem:[#allocation14_spill]] }
 0xbe4   : > { %s3820_s24 = sld [smem:[#allocation22_spill]] }
 0xbe8   : > { %p2715_p2 = scmp.ge.s32.totalorder %s3818_s21, 2 }
 0xbe9   : > { %s2199_s23 = sand.u32 1, %s3819_s8  }
 0xbea   : > { %p3821_p5 = scmp.ne.s32.totalorder %s3820_s24, 0  ;;  %s2200_s6 = scalar_lea.sflag [#allocation5], %s2199_s23 }
 0xbec   : > { %p2711_p7 = pnand %p2715_p2, %p3821_p5 }
 0xbee   : > { %p2712_p9 = pneg %p2711_p7 }
 0xbf0   : > { %2995 = dma.done.wait (%p2712_p9), %s2200_s6, 128  }
 0xbf1   : > { %2997 = vsyncadd (%p2712_p9), %s2200_s6, 4294967168  ;;  %s38_s3 = sadd.s32 1, %s3818_s21   ;;  %s3822_s0 = sld [smem:[#allocation12_spill]] }
 0xbf2   : > { %p35_p11 = scmp.ge.s32.totalorder %s38_s3, 6   ;;  %s3823_s30 = sld [smem:[#allocation13_spill]] }
 0xbf3   : > { %s3824_s20 = sld [smem:[#allocation25_spill]] }
 0xbf4   : > { %s3825_s21 = sld [smem:[#allocation15_spill]] }
 0xbf5   : > { %s3826_s1 = sld [smem:[#allocation16_spill]] }
 0xbf6   : > { %s3827_s22 = sld [smem:[#allocation26_spill]]  ;;  %37 = sbr.rel (!%p35_p11) target bundleno = 31 (0x1f), region = 213 }
 0xbf7   : > { %s3828_s2 = sld [smem:[#allocation18_spill]] }
 0xbf8   : > { %s3829_s23 = sld [smem:[#allocation19_spill]] }
 0xbf9   : > { %s3830_s24 = sld [smem:[#allocation23_spill]] }
 0xbfa   : > { %s3831_s25 = sld [smem:[#allocation24_spill]] }
 0xbfb   :  { %2205 = vsyncpa [#allocation4], 1 }
 0xbfc   :  { %2207 = vsyncpa [#allocation4 + $0x1], 1 }
 0xbfd   :  { %2208 = vsyncpa [#allocation7], 1 }
 0xbfe   :  { %2210 = vsyncpa [#allocation7 + $0x1], 1 }
 0xbff   :  { %2211 = vsyncpa [#allocation5], 1 }
 0xc00   :  { %2213 = vsyncpa [#allocation5 + $0x1], 1 }

</bundles_post_ra>
